<compile_context>
chip_gen: v5e
topology: v5e:2x2
jax: 0.10.0
libtpu: 0.0.40
codegen_flags: <defaults>
</compile_context>

<pallas_src>
import jax
import jax.numpy as jnp
from jax.experimental import pallas as pl
from jax.experimental.pallas import tpu as pltpu

# ---- problem sizes (small, consistent with the module's forward) -------------
B, T_Q, T_P = 8, 8, 8          # batch, question length, program length
VOCAB, HID = 128, 128          # shared vocab / hidden size for the stand-ins
BETA = 0.1                     # KL coefficient (beta)
BASELINE_DECAY = 0.99          # REINFORCE moving-average baseline decay (delta)

_STATS_ROWS, _STATS_COLS = 8, 128   # lane-dense packed scalar-output slab


def _log_softmax(x):
    m = jnp.max(x, axis=-1, keepdims=True)
    return x - (m + jnp.log(jnp.sum(jnp.exp(x - m), axis=-1, keepdims=True)))


def _mean_over_batch(x):
    # (B, 1) -> (1, 1)
    return jnp.sum(jnp.sum(x, axis=1, keepdims=True), axis=0, keepdims=True) * (1.0 / B)


# ------------------------------------------------------------------------------
# Fused kernel: counts -> bag-embed -> head -> log-softmax for the three
# stand-in sub-models, then the exact QuestionCodingElbo / Reinforce math.
# ------------------------------------------------------------------------------
def _fused_question_coding_elbo_kernel(tok_ref, base_ref, emb_q_ref, w_gen_ref,
                                       emb_rp_ref, w_rp_ref, stats_ref):
    f32 = jnp.float32
    bf16 = jnp.bfloat16

    lane = jax.lax.broadcasted_iota(jnp.int32, (B, VOCAB), 1)

    # ---- question token counts, built in-kernel (no host one_hot) ------------
    tok = tok_ref[...]                                           # (B, T_Q) int32
    q_counts = jnp.zeros((B, VOCAB), f32)
    for t in range(T_Q):                                         # tiny static unroll
        q_counts = q_counts + (lane == tok[:, t:t + 1]).astype(f32)

    # ---- program generator: bag-embed -> head -> log-softmax (bf16 MXU) ------
    q_bag = (q_counts * (1.0 / T_Q)).astype(bf16)                # (B, V)
    h_gen = jnp.dot(q_bag, emb_q_ref[...], preferred_element_type=f32)    # (B, H)
    logits_gen = jnp.dot(h_gen.astype(bf16), w_gen_ref[...],
                         preferred_element_type=f32)             # (B, V)
    m_gen = jnp.max(logits_gen, axis=-1, keepdims=True)
    logp_gen = logits_gen - (m_gen + jnp.log(
        jnp.sum(jnp.exp(logits_gen - m_gen), axis=-1, keepdims=True)))

    # greedy "sample" (argmax with first-occurrence tie-break)
    # TODO(synk): the real ProgramGenerator does autoregressive LSTM sampling;
    # stood-in by greedy argmax + position offsets (no clean Pallas equivalent).
    pred = jnp.min(jnp.where(logits_gen >= m_gen, lane, VOCAB),
                   axis=-1, keepdims=True)                       # (B, 1) int32

    # sampled_programs[b, t] = (pred[b] + t) % VOCAB -> program token counts
    p_counts = jnp.zeros((B, VOCAB), f32)
    for t in range(T_P):
        tv = pred + t
        tv = jnp.where(tv >= VOCAB, tv - VOCAB, tv)
        p_counts = p_counts + (lane == tv).astype(f32)

    # generation NLL reuses the already-resident logprobs (no duplicate matmul)
    loss_gen = -jnp.sum(p_counts * logp_gen, axis=-1, keepdims=True) * (1.0 / T_P)

    # ---- question reconstructor + program prior: 256-wide fused MXU passes ---
    p_bag = (p_counts * (1.0 / T_P)).astype(bf16)                # (B, V)
    h_rp = jnp.dot(p_bag, emb_rp_ref[...], preferred_element_type=f32)    # (B, 2H)
    logits_rp = jnp.dot(h_rp.astype(bf16), w_rp_ref[...],
                        preferred_element_type=f32)              # (B, 2V)
    logp_rec = _log_softmax(logits_rp[:, :VOCAB])
    logp_pri = _log_softmax(logits_rp[:, VOCAB:])
    loss_rec = -jnp.sum(q_counts * logp_rec, axis=-1, keepdims=True) * (1.0 / T_Q)
    loss_pri = -jnp.sum(p_counts * logp_pri, axis=-1, keepdims=True) * (1.0 / T_P)

    # ---- QuestionCodingElbo / Reinforce math (matches the PyTorch module) ----
    gen = -loss_gen                                              # logprobs_generation
    rec = -loss_rec                                              # logprobs_reconstruction
    pri = -loss_pri                                              # logprobs_prior
    baseline = base_ref[...]                                     # (1, 1) old baseline

    reward = rec + BETA * (pri - gen)                            # reinforce_reward
    centered = reward - baseline                                 # uses OLD baseline
    new_baseline = baseline + BASELINE_DECAY * _mean_over_batch(centered)
    reinforce_estimator = gen * centered
    kl = reinforce_estimator - BETA * gen
    elbo = rec - kl

    rec_m = _mean_over_batch(rec)
    kl_m = _mean_over_batch(kl)
    elbo_m = _mean_over_batch(elbo)
    rew_m = _mean_over_batch(reward)

    # ---- pack the 5 scalars into one lane-dense (8,128) slab (single store) --
    sub = jax.lax.broadcasted_iota(jnp.int32, (_STATS_ROWS, _STATS_COLS), 0)
    col = jax.lax.broadcasted_iota(jnp.int32, (_STATS_ROWS, _STATS_COLS), 1)
    row0 = sub == 0
    out = jnp.where(row0 & (col == 0), rec_m,
                    jnp.zeros((_STATS_ROWS, _STATS_COLS), f32))
    out = jnp.where(row0 & (col == 1), kl_m, out)
    out = jnp.where(row0 & (col == 2), elbo_m, out)
    out = jnp.where(row0 & (col == 3), rew_m, out)
    out = jnp.where(row0 & (col == 4), new_baseline, out)
    stats_ref[...] = out


# ------------------------------------------------------------------------------
# Init-time parameter packing (done once, not per forward call).
# ------------------------------------------------------------------------------
def pack_submodel_params(emb_q, w_prog_head, emb_p, w_q_head, emb_prior, w_prior_head):
    emb_rp = jnp.concatenate([emb_p, emb_prior], axis=1)                 # (V, 2H)
    w_rp = jnp.zeros((2 * HID, 2 * VOCAB), jnp.float32)                  # block-diag heads
    w_rp = w_rp.at[:HID, :VOCAB].set(w_q_head)
    w_rp = w_rp.at[HID:, VOCAB:].set(w_prior_head)                       # (2H, 2V)
    return (emb_q.astype(jnp.bfloat16), w_prog_head.astype(jnp.bfloat16),
            emb_rp.astype(jnp.bfloat16), w_rp.astype(jnp.bfloat16))


def _cost_estimate():
    flops = (2 * B * VOCAB * HID                 # generator bag-embed
             + 2 * B * HID * VOCAB               # generator head
             + 2 * B * VOCAB * (2 * HID)         # rec+prior bag-embed (fused N)
             + 2 * B * (2 * HID) * (2 * VOCAB))  # rec+prior heads (block-diag)
    transcendentals = 3 * B * VOCAB + 3 * B      # exps + logs of 3 log-softmaxes
    bytes_accessed = (B * T_Q * 4 + 4                                    # tokens + baseline
                      + 2 * (VOCAB * HID + HID * VOCAB
                             + VOCAB * 2 * HID + 2 * HID * 2 * VOCAB)    # bf16 weights
                      + _STATS_ROWS * _STATS_COLS * 4)                   # packed output
    return pl.CostEstimate(flops=flops, transcendentals=transcendentals,
                           bytes_accessed=bytes_accessed)


@jax.jit
def question_coding_elbo(question_tokens, baseline,
                         emb_q_bf16, w_gen_bf16, emb_rp_bf16, w_rp_bf16):
    stats = pl.pallas_call(
        _fused_question_coding_elbo_kernel,
        grid=(1,),
        in_specs=[
            pl.BlockSpec((B, T_Q), lambda i: (0, 0)),
            pl.BlockSpec((1, 1), lambda i: (0, 0)),
            pl.BlockSpec((VOCAB, HID), lambda i: (0, 0)),
            pl.BlockSpec((HID, VOCAB), lambda i: (0, 0)),
            pl.BlockSpec((VOCAB, 2 * HID), lambda i: (0, 0)),
            pl.BlockSpec((2 * HID, 2 * VOCAB), lambda i: (0, 0)),
        ],
        out_specs=pl.BlockSpec((_STATS_ROWS, _STATS_COLS), lambda i: (0, 0)),
        out_shape=jax.ShapeDtypeStruct((_STATS_ROWS, _STATS_COLS), jnp.float32),
        compiler_params=pltpu.CompilerParams(
            dimension_semantics=("arbitrary",)),
        cost_estimate=_cost_estimate(),
    )(question_tokens, baseline, emb_q_bf16, w_gen_bf16, emb_rp_bf16, w_rp_bf16)

    outputs = {
        "reconstruction_likelihood": stats[0, 0],
        "kl_divergence": stats[0, 1],
        "elbo": stats[0, 2],
        "reinforce_reward": stats[0, 3],
    }
    new_baseline = stats[0:1, 4:5]   # functionalized Reinforce._reinforce_baseline
    return outputs, new_baseline


if __name__ == "__main__":
    key = jax.random.PRNGKey(0)
    k = jax.random.split(key, 8)

    question_tokens = jax.random.randint(k[0], (B, T_Q), 0, VOCAB, dtype=jnp.int32)

    # deterministic synthetic parameters for the three stand-in sub-models
    emb_q        = 0.1 * jax.random.normal(k[1], (VOCAB, HID), jnp.float32)
    w_prog_head  = 0.1 * jax.random.normal(k[2], (HID, VOCAB), jnp.float32)
    emb_p        = 0.1 * jax.random.normal(k[3], (VOCAB, HID), jnp.float32)
    w_q_head     = 0.1 * jax.random.normal(k[4], (HID, VOCAB), jnp.float32)
    emb_prior    = 0.1 * jax.random.normal(k[5], (VOCAB, HID), jnp.float32)
    w_prior_head = 0.1 * jax.random.normal(k[6], (HID, VOCAB), jnp.float32)

    params = pack_submodel_params(emb_q, w_prog_head, emb_p, w_q_head,
                                  emb_prior, w_prior_head)

    baseline = jnp.zeros((1, 1), jnp.float32)   # Reinforce._reinforce_baseline = 0.0

    outputs, new_baseline = question_coding_elbo(question_tokens, baseline, *params)
    jax.block_until_ready((outputs, new_baseline))

    # basic sanity: all reported statistics are finite
    assert all(bool(jnp.isfinite(v)) for v in outputs.values())
    assert bool(jnp.isfinite(new_baseline[0, 0]))
    print("KERNEL_OK")
</pallas_src>

<mosaic_0001>
module attributes {stable_mosaic.version = 11 : i64} {
  func.func @_fused_question_coding_elbo_kernel(%arg0: i32, %arg1: memref<8x8xi32, #tpu.memory_space<vmem>>, %arg2: memref<1x1xf32, #tpu.memory_space<vmem>>, %arg3: memref<128x128xbf16, #tpu.memory_space<vmem>>, %arg4: memref<128x128xbf16, #tpu.memory_space<vmem>>, %arg5: memref<128x256xbf16, #tpu.memory_space<vmem>>, %arg6: memref<256x256xbf16, #tpu.memory_space<vmem>>, %arg7: memref<8x128xf32, #tpu.memory_space<vmem>>) attributes {dimension_semantics = [#tpu.dimension_semantics<arbitrary>], iteration_bounds = array<i64: 1>, scalar_prefetch = 0 : i64, scratch_operands = 0 : i64, tpu.core_type = #tpu.core_type<tc>, window_params = [{pipeline_mode = #tpu.pipeline_mode<synchronous>, transform_indices = @transform_0, window_bounds = array<i64: 8, 8>}, {pipeline_mode = #tpu.pipeline_mode<synchronous>, transform_indices = @transform_1, window_bounds = array<i64: 1, 1>}, {pipeline_mode = #tpu.pipeline_mode<synchronous>, transform_indices = @transform_2, window_bounds = array<i64: 128, 128>}, {pipeline_mode = #tpu.pipeline_mode<synchronous>, transform_indices = @transform_3, window_bounds = array<i64: 128, 128>}, {pipeline_mode = #tpu.pipeline_mode<synchronous>, transform_indices = @transform_4, window_bounds = array<i64: 128, 256>}, {pipeline_mode = #tpu.pipeline_mode<synchronous>, transform_indices = @transform_5, window_bounds = array<i64: 256, 256>}, {pipeline_mode = #tpu.pipeline_mode<synchronous>, transform_indices = @transform_6, window_bounds = array<i64: 8, 128>}]} {
    %0 = tpu.iota {dimensions = array<i32: 1>} : vector<8x128xi32>
    %c0 = arith.constant 0 : index
    %c0_0 = arith.constant 0 : index
    %1 = vector.load %arg1[%c0, %c0_0] : memref<8x8xi32, #tpu.memory_space<vmem>>, vector<8x8xi32>
    %cst = arith.constant 0.000000e+00 : f32
    %2 = vector.broadcast %cst : f32 to vector<8x128xf32>
    %3 = vector.extract_strided_slice %1 {offsets = [0, 0], sizes = [8, 1], strides = [1, 1]} : vector<8x8xi32> to vector<8x1xi32>
    %4 = vector.broadcast %3 : vector<8x1xi32> to vector<8x128xi32>
    %5 = arith.cmpi eq, %0, %4 : vector<8x128xi32>
    %6 = arith.extui %5 : vector<8x128xi1> to vector<8x128xi32>
    %7 = arith.sitofp %6 : vector<8x128xi32> to vector<8x128xf32>
    %8 = arith.addf %2, %7 : vector<8x128xf32>
    %9 = vector.extract_strided_slice %1 {offsets = [0, 1], sizes = [8, 1], strides = [1, 1]} : vector<8x8xi32> to vector<8x1xi32>
    %10 = vector.broadcast %9 : vector<8x1xi32> to vector<8x128xi32>
    %11 = arith.cmpi eq, %0, %10 : vector<8x128xi32>
    %12 = arith.extui %11 : vector<8x128xi1> to vector<8x128xi32>
    %13 = arith.sitofp %12 : vector<8x128xi32> to vector<8x128xf32>
    %14 = arith.addf %8, %13 : vector<8x128xf32>
    %15 = vector.extract_strided_slice %1 {offsets = [0, 2], sizes = [8, 1], strides = [1, 1]} : vector<8x8xi32> to vector<8x1xi32>
    %16 = vector.broadcast %15 : vector<8x1xi32> to vector<8x128xi32>
    %17 = arith.cmpi eq, %0, %16 : vector<8x128xi32>
    %18 = arith.extui %17 : vector<8x128xi1> to vector<8x128xi32>
    %19 = arith.sitofp %18 : vector<8x128xi32> to vector<8x128xf32>
    %20 = arith.addf %14, %19 : vector<8x128xf32>
    %21 = vector.extract_strided_slice %1 {offsets = [0, 3], sizes = [8, 1], strides = [1, 1]} : vector<8x8xi32> to vector<8x1xi32>
    %22 = vector.broadcast %21 : vector<8x1xi32> to vector<8x128xi32>
    %23 = arith.cmpi eq, %0, %22 : vector<8x128xi32>
    %24 = arith.extui %23 : vector<8x128xi1> to vector<8x128xi32>
    %25 = arith.sitofp %24 : vector<8x128xi32> to vector<8x128xf32>
    %26 = arith.addf %20, %25 : vector<8x128xf32>
    %27 = vector.extract_strided_slice %1 {offsets = [0, 4], sizes = [8, 1], strides = [1, 1]} : vector<8x8xi32> to vector<8x1xi32>
    %28 = vector.broadcast %27 : vector<8x1xi32> to vector<8x128xi32>
    %29 = arith.cmpi eq, %0, %28 : vector<8x128xi32>
    %30 = arith.extui %29 : vector<8x128xi1> to vector<8x128xi32>
    %31 = arith.sitofp %30 : vector<8x128xi32> to vector<8x128xf32>
    %32 = arith.addf %26, %31 : vector<8x128xf32>
    %33 = vector.extract_strided_slice %1 {offsets = [0, 5], sizes = [8, 1], strides = [1, 1]} : vector<8x8xi32> to vector<8x1xi32>
    %34 = vector.broadcast %33 : vector<8x1xi32> to vector<8x128xi32>
    %35 = arith.cmpi eq, %0, %34 : vector<8x128xi32>
    %36 = arith.extui %35 : vector<8x128xi1> to vector<8x128xi32>
    %37 = arith.sitofp %36 : vector<8x128xi32> to vector<8x128xf32>
    %38 = arith.addf %32, %37 : vector<8x128xf32>
    %39 = vector.extract_strided_slice %1 {offsets = [0, 6], sizes = [8, 1], strides = [1, 1]} : vector<8x8xi32> to vector<8x1xi32>
    %40 = vector.broadcast %39 : vector<8x1xi32> to vector<8x128xi32>
    %41 = arith.cmpi eq, %0, %40 : vector<8x128xi32>
    %42 = arith.extui %41 : vector<8x128xi1> to vector<8x128xi32>
    %43 = arith.sitofp %42 : vector<8x128xi32> to vector<8x128xf32>
    %44 = arith.addf %38, %43 : vector<8x128xf32>
    %45 = vector.extract_strided_slice %1 {offsets = [0, 7], sizes = [8, 1], strides = [1, 1]} : vector<8x8xi32> to vector<8x1xi32>
    %46 = vector.broadcast %45 : vector<8x1xi32> to vector<8x128xi32>
    %47 = arith.cmpi eq, %0, %46 : vector<8x128xi32>
    %48 = arith.extui %47 : vector<8x128xi1> to vector<8x128xi32>
    %49 = arith.sitofp %48 : vector<8x128xi32> to vector<8x128xf32>
    %50 = arith.addf %44, %49 : vector<8x128xf32>
    %cst_1 = arith.constant 1.250000e-01 : f32
    %51 = vector.broadcast %cst_1 : f32 to vector<8x128xf32>
    %52 = arith.mulf %50, %51 : vector<8x128xf32>
    %53 = arith.truncf %52 : vector<8x128xf32> to vector<8x128xbf16>
    %c0_2 = arith.constant 0 : index
    %c0_3 = arith.constant 0 : index
    %54 = vector.load %arg3[%c0_2, %c0_3] : memref<128x128xbf16, #tpu.memory_space<vmem>>, vector<128x128xbf16>
    %cst_4 = arith.constant dense<0.000000e+00> : vector<8x128xf32>
    %55 = tpu.matmul %53, %54, %cst_4 {dimension_numbers = #tpu.dot_dimension_numbers<[1], [0], [0], [1], [0, 0, 1, 1], [], []>} : vector<8x128xbf16>, vector<128x128xbf16>, vector<8x128xf32> -> vector<8x128xf32>
    %56 = arith.truncf %55 : vector<8x128xf32> to vector<8x128xbf16>
    %c0_5 = arith.constant 0 : index
    %c0_6 = arith.constant 0 : index
    %57 = vector.load %arg4[%c0_5, %c0_6] : memref<128x128xbf16, #tpu.memory_space<vmem>>, vector<128x128xbf16>
    %cst_7 = arith.constant dense<0.000000e+00> : vector<8x128xf32>
    %58 = tpu.matmul %56, %57, %cst_7 {dimension_numbers = #tpu.dot_dimension_numbers<[1], [0], [0], [1], [0, 0, 1, 1], [], []>} : vector<8x128xbf16>, vector<128x128xbf16>, vector<8x128xf32> -> vector<8x128xf32>
    %cst_8 = arith.constant dense<0xFF800000> : vector<8xf32>
    %59 = vector.multi_reduction <maximumf>, %58, %cst_8 [1] : vector<8x128xf32> to vector<8xf32>
    %60 = vector.shape_cast %59 : vector<8xf32> to vector<8x1xf32>
    %61 = vector.broadcast %60 : vector<8x1xf32> to vector<8x128xf32>
    %62 = arith.subf %58, %61 : vector<8x128xf32>
    %63 = math.exp %62 : vector<8x128xf32>
    %cst_9 = arith.constant dense<0.000000e+00> : vector<8xf32>
    %64 = vector.multi_reduction <add>, %63, %cst_9 [1] : vector<8x128xf32> to vector<8xf32>
    %65 = vector.shape_cast %64 : vector<8xf32> to vector<8x1xf32>
    %66 = math.log %65 : vector<8x1xf32>
    %67 = arith.addf %60, %66 : vector<8x1xf32>
    %68 = vector.broadcast %67 : vector<8x1xf32> to vector<8x128xf32>
    %69 = arith.subf %58, %68 : vector<8x128xf32>
    %70 = vector.broadcast %60 : vector<8x1xf32> to vector<8x128xf32>
    %71 = arith.cmpf oge, %58, %70 : vector<8x128xf32>
    %c128_i32 = arith.constant 128 : i32
    %72 = vector.broadcast %c128_i32 : i32 to vector<8x128xi32>
    %73 = arith.select %71, %0, %72 : vector<8x128xi1>, vector<8x128xi32>
    %cst_10 = arith.constant dense<2147483647> : vector<8xi32>
    %74 = vector.multi_reduction <minsi>, %73, %cst_10 [1] : vector<8x128xi32> to vector<8xi32>
    %75 = vector.shape_cast %74 : vector<8xi32> to vector<8x1xi32>
    %cst_11 = arith.constant 0.000000e+00 : f32
    %76 = vector.broadcast %cst_11 : f32 to vector<8x128xf32>
    %c0_i32 = arith.constant 0 : i32
    %77 = vector.broadcast %c0_i32 : i32 to vector<8x1xi32>
    %78 = arith.addi %75, %77 : vector<8x1xi32>
    %c128_i32_12 = arith.constant 128 : i32
    %79 = vector.broadcast %c128_i32_12 : i32 to vector<8x1xi32>
    %80 = arith.cmpi sge, %78, %79 : vector<8x1xi32>
    %c128_i32_13 = arith.constant 128 : i32
    %81 = vector.broadcast %c128_i32_13 : i32 to vector<8x1xi32>
    %82 = arith.subi %78, %81 : vector<8x1xi32>
    %83 = arith.select %80, %82, %78 : vector<8x1xi1>, vector<8x1xi32>
    %84 = vector.broadcast %83 : vector<8x1xi32> to vector<8x128xi32>
    %85 = arith.cmpi eq, %0, %84 : vector<8x128xi32>
    %86 = arith.extui %85 : vector<8x128xi1> to vector<8x128xi32>
    %87 = arith.sitofp %86 : vector<8x128xi32> to vector<8x128xf32>
    %88 = arith.addf %76, %87 : vector<8x128xf32>
    %c1_i32 = arith.constant 1 : i32
    %89 = vector.broadcast %c1_i32 : i32 to vector<8x1xi32>
    %90 = arith.addi %75, %89 : vector<8x1xi32>
    %c128_i32_14 = arith.constant 128 : i32
    %91 = vector.broadcast %c128_i32_14 : i32 to vector<8x1xi32>
    %92 = arith.cmpi sge, %90, %91 : vector<8x1xi32>
    %c128_i32_15 = arith.constant 128 : i32
    %93 = vector.broadcast %c128_i32_15 : i32 to vector<8x1xi32>
    %94 = arith.subi %90, %93 : vector<8x1xi32>
    %95 = arith.select %92, %94, %90 : vector<8x1xi1>, vector<8x1xi32>
    %96 = vector.broadcast %95 : vector<8x1xi32> to vector<8x128xi32>
    %97 = arith.cmpi eq, %0, %96 : vector<8x128xi32>
    %98 = arith.extui %97 : vector<8x128xi1> to vector<8x128xi32>
    %99 = arith.sitofp %98 : vector<8x128xi32> to vector<8x128xf32>
    %100 = arith.addf %88, %99 : vector<8x128xf32>
    %c2_i32 = arith.constant 2 : i32
    %101 = vector.broadcast %c2_i32 : i32 to vector<8x1xi32>
    %102 = arith.addi %75, %101 : vector<8x1xi32>
    %c128_i32_16 = arith.constant 128 : i32
    %103 = vector.broadcast %c128_i32_16 : i32 to vector<8x1xi32>
    %104 = arith.cmpi sge, %102, %103 : vector<8x1xi32>
    %c128_i32_17 = arith.constant 128 : i32
    %105 = vector.broadcast %c128_i32_17 : i32 to vector<8x1xi32>
    %106 = arith.subi %102, %105 : vector<8x1xi32>
    %107 = arith.select %104, %106, %102 : vector<8x1xi1>, vector<8x1xi32>
    %108 = vector.broadcast %107 : vector<8x1xi32> to vector<8x128xi32>
    %109 = arith.cmpi eq, %0, %108 : vector<8x128xi32>
    %110 = arith.extui %109 : vector<8x128xi1> to vector<8x128xi32>
    %111 = arith.sitofp %110 : vector<8x128xi32> to vector<8x128xf32>
    %112 = arith.addf %100, %111 : vector<8x128xf32>
    %c3_i32 = arith.constant 3 : i32
    %113 = vector.broadcast %c3_i32 : i32 to vector<8x1xi32>
    %114 = arith.addi %75, %113 : vector<8x1xi32>
    %c128_i32_18 = arith.constant 128 : i32
    %115 = vector.broadcast %c128_i32_18 : i32 to vector<8x1xi32>
    %116 = arith.cmpi sge, %114, %115 : vector<8x1xi32>
    %c128_i32_19 = arith.constant 128 : i32
    %117 = vector.broadcast %c128_i32_19 : i32 to vector<8x1xi32>
    %118 = arith.subi %114, %117 : vector<8x1xi32>
    %119 = arith.select %116, %118, %114 : vector<8x1xi1>, vector<8x1xi32>
    %120 = vector.broadcast %119 : vector<8x1xi32> to vector<8x128xi32>
    %121 = arith.cmpi eq, %0, %120 : vector<8x128xi32>
    %122 = arith.extui %121 : vector<8x128xi1> to vector<8x128xi32>
    %123 = arith.sitofp %122 : vector<8x128xi32> to vector<8x128xf32>
    %124 = arith.addf %112, %123 : vector<8x128xf32>
    %c4_i32 = arith.constant 4 : i32
    %125 = vector.broadcast %c4_i32 : i32 to vector<8x1xi32>
    %126 = arith.addi %75, %125 : vector<8x1xi32>
    %c128_i32_20 = arith.constant 128 : i32
    %127 = vector.broadcast %c128_i32_20 : i32 to vector<8x1xi32>
    %128 = arith.cmpi sge, %126, %127 : vector<8x1xi32>
    %c128_i32_21 = arith.constant 128 : i32
    %129 = vector.broadcast %c128_i32_21 : i32 to vector<8x1xi32>
    %130 = arith.subi %126, %129 : vector<8x1xi32>
    %131 = arith.select %128, %130, %126 : vector<8x1xi1>, vector<8x1xi32>
    %132 = vector.broadcast %131 : vector<8x1xi32> to vector<8x128xi32>
    %133 = arith.cmpi eq, %0, %132 : vector<8x128xi32>
    %134 = arith.extui %133 : vector<8x128xi1> to vector<8x128xi32>
    %135 = arith.sitofp %134 : vector<8x128xi32> to vector<8x128xf32>
    %136 = arith.addf %124, %135 : vector<8x128xf32>
    %c5_i32 = arith.constant 5 : i32
    %137 = vector.broadcast %c5_i32 : i32 to vector<8x1xi32>
    %138 = arith.addi %75, %137 : vector<8x1xi32>
    %c128_i32_22 = arith.constant 128 : i32
    %139 = vector.broadcast %c128_i32_22 : i32 to vector<8x1xi32>
    %140 = arith.cmpi sge, %138, %139 : vector<8x1xi32>
    %c128_i32_23 = arith.constant 128 : i32
    %141 = vector.broadcast %c128_i32_23 : i32 to vector<8x1xi32>
    %142 = arith.subi %138, %141 : vector<8x1xi32>
    %143 = arith.select %140, %142, %138 : vector<8x1xi1>, vector<8x1xi32>
    %144 = vector.broadcast %143 : vector<8x1xi32> to vector<8x128xi32>
    %145 = arith.cmpi eq, %0, %144 : vector<8x128xi32>
    %146 = arith.extui %145 : vector<8x128xi1> to vector<8x128xi32>
    %147 = arith.sitofp %146 : vector<8x128xi32> to vector<8x128xf32>
    %148 = arith.addf %136, %147 : vector<8x128xf32>
    %c6_i32 = arith.constant 6 : i32
    %149 = vector.broadcast %c6_i32 : i32 to vector<8x1xi32>
    %150 = arith.addi %75, %149 : vector<8x1xi32>
    %c128_i32_24 = arith.constant 128 : i32
    %151 = vector.broadcast %c128_i32_24 : i32 to vector<8x1xi32>
    %152 = arith.cmpi sge, %150, %151 : vector<8x1xi32>
    %c128_i32_25 = arith.constant 128 : i32
    %153 = vector.broadcast %c128_i32_25 : i32 to vector<8x1xi32>
    %154 = arith.subi %150, %153 : vector<8x1xi32>
    %155 = arith.select %152, %154, %150 : vector<8x1xi1>, vector<8x1xi32>
    %156 = vector.broadcast %155 : vector<8x1xi32> to vector<8x128xi32>
    %157 = arith.cmpi eq, %0, %156 : vector<8x128xi32>
    %158 = arith.extui %157 : vector<8x128xi1> to vector<8x128xi32>
    %159 = arith.sitofp %158 : vector<8x128xi32> to vector<8x128xf32>
    %160 = arith.addf %148, %159 : vector<8x128xf32>
    %c7_i32 = arith.constant 7 : i32
    %161 = vector.broadcast %c7_i32 : i32 to vector<8x1xi32>
    %162 = arith.addi %75, %161 : vector<8x1xi32>
    %c128_i32_26 = arith.constant 128 : i32
    %163 = vector.broadcast %c128_i32_26 : i32 to vector<8x1xi32>
    %164 = arith.cmpi sge, %162, %163 : vector<8x1xi32>
    %c128_i32_27 = arith.constant 128 : i32
    %165 = vector.broadcast %c128_i32_27 : i32 to vector<8x1xi32>
    %166 = arith.subi %162, %165 : vector<8x1xi32>
    %167 = arith.select %164, %166, %162 : vector<8x1xi1>, vector<8x1xi32>
    %168 = vector.broadcast %167 : vector<8x1xi32> to vector<8x128xi32>
    %169 = arith.cmpi eq, %0, %168 : vector<8x128xi32>
    %170 = arith.extui %169 : vector<8x128xi1> to vector<8x128xi32>
    %171 = arith.sitofp %170 : vector<8x128xi32> to vector<8x128xf32>
    %172 = arith.addf %160, %171 : vector<8x128xf32>
    %173 = arith.mulf %172, %69 : vector<8x128xf32>
    %cst_28 = arith.constant dense<0.000000e+00> : vector<8xf32>
    %174 = vector.multi_reduction <add>, %173, %cst_28 [1] : vector<8x128xf32> to vector<8xf32>
    %175 = vector.shape_cast %174 : vector<8xf32> to vector<8x1xf32>
    %cst_29 = arith.constant 0.000000e+00 : f32
    %176 = vector.broadcast %cst_29 : f32 to vector<8x1xf32>
    %177 = arith.subf %176, %175 : vector<8x1xf32>
    %cst_30 = arith.constant 1.250000e-01 : f32
    %178 = vector.broadcast %cst_30 : f32 to vector<8x1xf32>
    %179 = arith.mulf %177, %178 : vector<8x1xf32>
    %cst_31 = arith.constant 1.250000e-01 : f32
    %180 = vector.broadcast %cst_31 : f32 to vector<8x128xf32>
    %181 = arith.mulf %172, %180 : vector<8x128xf32>
    %182 = arith.truncf %181 : vector<8x128xf32> to vector<8x128xbf16>
    %c0_32 = arith.constant 0 : index
    %c0_33 = arith.constant 0 : index
    %183 = vector.load %arg5[%c0_32, %c0_33] : memref<128x256xbf16, #tpu.memory_space<vmem>>, vector<128x256xbf16>
    %cst_34 = arith.constant dense<0.000000e+00> : vector<8x256xf32>
    %184 = tpu.matmul %182, %183, %cst_34 {dimension_numbers = #tpu.dot_dimension_numbers<[1], [0], [0], [1], [0, 0, 1, 1], [], []>} : vector<8x128xbf16>, vector<128x256xbf16>, vector<8x256xf32> -> vector<8x256xf32>
    %185 = arith.truncf %184 : vector<8x256xf32> to vector<8x256xbf16>
    %c0_35 = arith.constant 0 : index
    %c0_36 = arith.constant 0 : index
    %186 = vector.load %arg6[%c0_35, %c0_36] : memref<256x256xbf16, #tpu.memory_space<vmem>>, vector<256x256xbf16>
    %cst_37 = arith.constant dense<0.000000e+00> : vector<8x256xf32>
    %187 = tpu.matmul %185, %186, %cst_37 {dimension_numbers = #tpu.dot_dimension_numbers<[1], [0], [0], [1], [0, 0, 1, 1], [], []>} : vector<8x256xbf16>, vector<256x256xbf16>, vector<8x256xf32> -> vector<8x256xf32>
    %188 = vector.extract_strided_slice %187 {offsets = [0, 0], sizes = [8, 128], strides = [1, 1]} : vector<8x256xf32> to vector<8x128xf32>
    %cst_38 = arith.constant dense<0xFF800000> : vector<8xf32>
    %189 = vector.multi_reduction <maximumf>, %188, %cst_38 [1] : vector<8x128xf32> to vector<8xf32>
    %190 = vector.shape_cast %189 : vector<8xf32> to vector<8x1xf32>
    %191 = vector.broadcast %190 : vector<8x1xf32> to vector<8x128xf32>
    %192 = arith.subf %188, %191 : vector<8x128xf32>
    %193 = math.exp %192 : vector<8x128xf32>
    %cst_39 = arith.constant dense<0.000000e+00> : vector<8xf32>
    %194 = vector.multi_reduction <add>, %193, %cst_39 [1] : vector<8x128xf32> to vector<8xf32>
    %195 = vector.shape_cast %194 : vector<8xf32> to vector<8x1xf32>
    %196 = math.log %195 : vector<8x1xf32>
    %197 = arith.addf %190, %196 : vector<8x1xf32>
    %198 = vector.broadcast %197 : vector<8x1xf32> to vector<8x128xf32>
    %199 = arith.subf %188, %198 : vector<8x128xf32>
    %200 = vector.extract_strided_slice %187 {offsets = [0, 128], sizes = [8, 128], strides = [1, 1]} : vector<8x256xf32> to vector<8x128xf32>
    %cst_40 = arith.constant dense<0xFF800000> : vector<8xf32>
    %201 = vector.multi_reduction <maximumf>, %200, %cst_40 [1] : vector<8x128xf32> to vector<8xf32>
    %202 = vector.shape_cast %201 : vector<8xf32> to vector<8x1xf32>
    %203 = vector.broadcast %202 : vector<8x1xf32> to vector<8x128xf32>
    %204 = arith.subf %200, %203 : vector<8x128xf32>
    %205 = math.exp %204 : vector<8x128xf32>
    %cst_41 = arith.constant dense<0.000000e+00> : vector<8xf32>
    %206 = vector.multi_reduction <add>, %205, %cst_41 [1] : vector<8x128xf32> to vector<8xf32>
    %207 = vector.shape_cast %206 : vector<8xf32> to vector<8x1xf32>
    %208 = math.log %207 : vector<8x1xf32>
    %209 = arith.addf %202, %208 : vector<8x1xf32>
    %210 = vector.broadcast %209 : vector<8x1xf32> to vector<8x128xf32>
    %211 = arith.subf %200, %210 : vector<8x128xf32>
    %212 = arith.mulf %50, %199 : vector<8x128xf32>
    %cst_42 = arith.constant dense<0.000000e+00> : vector<8xf32>
    %213 = vector.multi_reduction <add>, %212, %cst_42 [1] : vector<8x128xf32> to vector<8xf32>
    %214 = vector.shape_cast %213 : vector<8xf32> to vector<8x1xf32>
    %cst_43 = arith.constant 0.000000e+00 : f32
    %215 = vector.broadcast %cst_43 : f32 to vector<8x1xf32>
    %216 = arith.subf %215, %214 : vector<8x1xf32>
    %cst_44 = arith.constant 1.250000e-01 : f32
    %217 = vector.broadcast %cst_44 : f32 to vector<8x1xf32>
    %218 = arith.mulf %216, %217 : vector<8x1xf32>
    %219 = arith.mulf %172, %211 : vector<8x128xf32>
    %cst_45 = arith.constant dense<0.000000e+00> : vector<8xf32>
    %220 = vector.multi_reduction <add>, %219, %cst_45 [1] : vector<8x128xf32> to vector<8xf32>
    %221 = vector.shape_cast %220 : vector<8xf32> to vector<8x1xf32>
    %cst_46 = arith.constant 0.000000e+00 : f32
    %222 = vector.broadcast %cst_46 : f32 to vector<8x1xf32>
    %223 = arith.subf %222, %221 : vector<8x1xf32>
    %cst_47 = arith.constant 1.250000e-01 : f32
    %224 = vector.broadcast %cst_47 : f32 to vector<8x1xf32>
    %225 = arith.mulf %223, %224 : vector<8x1xf32>
    %cst_48 = arith.constant 0.000000e+00 : f32
    %226 = vector.broadcast %cst_48 : f32 to vector<8x1xf32>
    %227 = arith.subf %226, %179 : vector<8x1xf32>
    %cst_49 = arith.constant 0.000000e+00 : f32
    %228 = vector.broadcast %cst_49 : f32 to vector<8x1xf32>
    %229 = arith.subf %228, %218 : vector<8x1xf32>
    %cst_50 = arith.constant 0.000000e+00 : f32
    %230 = vector.broadcast %cst_50 : f32 to vector<8x1xf32>
    %231 = arith.subf %230, %225 : vector<8x1xf32>
    %c0_51 = arith.constant 0 : index
    %c0_52 = arith.constant 0 : index
    %232 = vector.load %arg2[%c0_51, %c0_52] : memref<1x1xf32, #tpu.memory_space<vmem>>, vector<1x1xf32>
    %233 = arith.subf %231, %227 : vector<8x1xf32>
    %cst_53 = arith.constant 1.000000e-01 : f32
    %234 = vector.broadcast %cst_53 : f32 to vector<8x1xf32>
    %235 = arith.mulf %234, %233 : vector<8x1xf32>
    %236 = arith.addf %229, %235 : vector<8x1xf32>
    %237 = vector.broadcast %232 : vector<1x1xf32> to vector<8x1xf32>
    %238 = arith.subf %236, %237 : vector<8x1xf32>
    %cst_54 = arith.constant dense<0.000000e+00> : vector<8xf32>
    %239 = vector.multi_reduction <add>, %238, %cst_54 [1] : vector<8x1xf32> to vector<8xf32>
    %240 = vector.shape_cast %239 : vector<8xf32> to vector<8x1xf32>
    %cst_55 = arith.constant dense<0.000000e+00> : vector<1xf32>
    %241 = vector.multi_reduction <add>, %240, %cst_55 [0] : vector<8x1xf32> to vector<1xf32>
    %242 = vector.shape_cast %241 : vector<1xf32> to vector<1x1xf32>
    %cst_56 = arith.constant 1.250000e-01 : f32
    %243 = vector.broadcast %cst_56 : f32 to vector<1x1xf32>
    %244 = arith.mulf %242, %243 : vector<1x1xf32>
    %cst_57 = arith.constant 9.900000e-01 : f32
    %245 = vector.broadcast %cst_57 : f32 to vector<1x1xf32>
    %246 = arith.mulf %245, %244 : vector<1x1xf32>
    %247 = arith.addf %232, %246 : vector<1x1xf32>
    %248 = arith.mulf %227, %238 : vector<8x1xf32>
    %cst_58 = arith.constant 1.000000e-01 : f32
    %249 = vector.broadcast %cst_58 : f32 to vector<8x1xf32>
    %250 = arith.mulf %249, %227 : vector<8x1xf32>
    %251 = arith.subf %248, %250 : vector<8x1xf32>
    %252 = arith.subf %229, %251 : vector<8x1xf32>
    %cst_59 = arith.constant dense<0.000000e+00> : vector<8xf32>
    %253 = vector.multi_reduction <add>, %229, %cst_59 [1] : vector<8x1xf32> to vector<8xf32>
    %254 = vector.shape_cast %253 : vector<8xf32> to vector<8x1xf32>
    %cst_60 = arith.constant dense<0.000000e+00> : vector<1xf32>
    %255 = vector.multi_reduction <add>, %254, %cst_60 [0] : vector<8x1xf32> to vector<1xf32>
    %256 = vector.shape_cast %255 : vector<1xf32> to vector<1x1xf32>
    %cst_61 = arith.constant 1.250000e-01 : f32
    %257 = vector.broadcast %cst_61 : f32 to vector<1x1xf32>
    %258 = arith.mulf %256, %257 : vector<1x1xf32>
    %cst_62 = arith.constant dense<0.000000e+00> : vector<8xf32>
    %259 = vector.multi_reduction <add>, %251, %cst_62 [1] : vector<8x1xf32> to vector<8xf32>
    %260 = vector.shape_cast %259 : vector<8xf32> to vector<8x1xf32>
    %cst_63 = arith.constant dense<0.000000e+00> : vector<1xf32>
    %261 = vector.multi_reduction <add>, %260, %cst_63 [0] : vector<8x1xf32> to vector<1xf32>
    %262 = vector.shape_cast %261 : vector<1xf32> to vector<1x1xf32>
    %cst_64 = arith.constant 1.250000e-01 : f32
    %263 = vector.broadcast %cst_64 : f32 to vector<1x1xf32>
    %264 = arith.mulf %262, %263 : vector<1x1xf32>
    %cst_65 = arith.constant dense<0.000000e+00> : vector<8xf32>
    %265 = vector.multi_reduction <add>, %252, %cst_65 [1] : vector<8x1xf32> to vector<8xf32>
    %266 = vector.shape_cast %265 : vector<8xf32> to vector<8x1xf32>
    %cst_66 = arith.constant dense<0.000000e+00> : vector<1xf32>
    %267 = vector.multi_reduction <add>, %266, %cst_66 [0] : vector<8x1xf32> to vector<1xf32>
    %268 = vector.shape_cast %267 : vector<1xf32> to vector<1x1xf32>
    %cst_67 = arith.constant 1.250000e-01 : f32
    %269 = vector.broadcast %cst_67 : f32 to vector<1x1xf32>
    %270 = arith.mulf %268, %269 : vector<1x1xf32>
    %cst_68 = arith.constant dense<0.000000e+00> : vector<8xf32>
    %271 = vector.multi_reduction <add>, %236, %cst_68 [1] : vector<8x1xf32> to vector<8xf32>
    %272 = vector.shape_cast %271 : vector<8xf32> to vector<8x1xf32>
    %cst_69 = arith.constant dense<0.000000e+00> : vector<1xf32>
    %273 = vector.multi_reduction <add>, %272, %cst_69 [0] : vector<8x1xf32> to vector<1xf32>
    %274 = vector.shape_cast %273 : vector<1xf32> to vector<1x1xf32>
    %cst_70 = arith.constant 1.250000e-01 : f32
    %275 = vector.broadcast %cst_70 : f32 to vector<1x1xf32>
    %276 = arith.mulf %274, %275 : vector<1x1xf32>
    %277 = tpu.iota {dimensions = array<i32: 0>} : vector<8x128xi32>
    %278 = tpu.iota {dimensions = array<i32: 1>} : vector<8x128xi32>
    %c0_i32_71 = arith.constant 0 : i32
    %279 = vector.broadcast %c0_i32_71 : i32 to vector<8x128xi32>
    %280 = arith.cmpi eq, %277, %279 : vector<8x128xi32>
    %c0_i32_72 = arith.constant 0 : i32
    %281 = vector.broadcast %c0_i32_72 : i32 to vector<8x128xi32>
    %282 = arith.cmpi eq, %278, %281 : vector<8x128xi32>
    %283 = arith.andi %280, %282 : vector<8x128xi1>
    %cst_73 = arith.constant 0.000000e+00 : f32
    %284 = vector.broadcast %cst_73 : f32 to vector<8x128xf32>
    %285 = vector.shape_cast %258 : vector<1x1xf32> to vector<1x1xf32>
    %286 = vector.broadcast %285 : vector<1x1xf32> to vector<8x128xf32>
    %287 = arith.select %283, %286, %284 : vector<8x128xi1>, vector<8x128xf32>
    %c1_i32_74 = arith.constant 1 : i32
    %288 = vector.broadcast %c1_i32_74 : i32 to vector<8x128xi32>
    %289 = arith.cmpi eq, %278, %288 : vector<8x128xi32>
    %290 = arith.andi %280, %289 : vector<8x128xi1>
    %291 = vector.shape_cast %264 : vector<1x1xf32> to vector<1x1xf32>
    %292 = vector.broadcast %291 : vector<1x1xf32> to vector<8x128xf32>
    %293 = arith.select %290, %292, %287 : vector<8x128xi1>, vector<8x128xf32>
    %c2_i32_75 = arith.constant 2 : i32
    %294 = vector.broadcast %c2_i32_75 : i32 to vector<8x128xi32>
    %295 = arith.cmpi eq, %278, %294 : vector<8x128xi32>
    %296 = arith.andi %280, %295 : vector<8x128xi1>
    %297 = vector.shape_cast %270 : vector<1x1xf32> to vector<1x1xf32>
    %298 = vector.broadcast %297 : vector<1x1xf32> to vector<8x128xf32>
    %299 = arith.select %296, %298, %293 : vector<8x128xi1>, vector<8x128xf32>
    %c3_i32_76 = arith.constant 3 : i32
    %300 = vector.broadcast %c3_i32_76 : i32 to vector<8x128xi32>
    %301 = arith.cmpi eq, %278, %300 : vector<8x128xi32>
    %302 = arith.andi %280, %301 : vector<8x128xi1>
    %303 = vector.shape_cast %276 : vector<1x1xf32> to vector<1x1xf32>
    %304 = vector.broadcast %303 : vector<1x1xf32> to vector<8x128xf32>
    %305 = arith.select %302, %304, %299 : vector<8x128xi1>, vector<8x128xf32>
    %c4_i32_77 = arith.constant 4 : i32
    %306 = vector.broadcast %c4_i32_77 : i32 to vector<8x128xi32>
    %307 = arith.cmpi eq, %278, %306 : vector<8x128xi32>
    %308 = arith.andi %280, %307 : vector<8x128xi1>
    %309 = vector.shape_cast %247 : vector<1x1xf32> to vector<1x1xf32>
    %310 = vector.broadcast %309 : vector<1x1xf32> to vector<8x128xf32>
    %311 = arith.select %308, %310, %305 : vector<8x128xi1>, vector<8x128xf32>
    %c0_78 = arith.constant 0 : index
    %c0_79 = arith.constant 0 : index
    %312 = vector.load %arg7[%c0_78, %c0_79] : memref<8x128xf32, #tpu.memory_space<vmem>>, vector<8x128xf32>
    tpu.vector_store %arg7[%c0_78, %c0_79], %311 {strides = array<i32>} : memref<8x128xf32, #tpu.memory_space<vmem>>, vector<8x128xf32>,
    return
  }
  func.func @transform_0(%arg0: i32) -> (i32, i32) {
    %c0_i32 = arith.constant 0 : i32
    %c0_i32_0 = arith.constant 0 : i32
    %c0_i32_1 = arith.constant 0 : i32
    return %c0_i32, %c0_i32_0 : i32, i32
  }
  func.func @transform_1(%arg0: i32) -> (i32, i32) {
    %c0_i32 = arith.constant 0 : i32
    %c0_i32_0 = arith.constant 0 : i32
    %c0_i32_1 = arith.constant 0 : i32
    return %c0_i32, %c0_i32_0 : i32, i32
  }
  func.func @transform_2(%arg0: i32) -> (i32, i32) {
    %c0_i32 = arith.constant 0 : i32
    %c0_i32_0 = arith.constant 0 : i32
    %c0_i32_1 = arith.constant 0 : i32
    return %c0_i32, %c0_i32_0 : i32, i32
  }
  func.func @transform_3(%arg0: i32) -> (i32, i32) {
    %c0_i32 = arith.constant 0 : i32
    %c0_i32_0 = arith.constant 0 : i32
    %c0_i32_1 = arith.constant 0 : i32
    return %c0_i32, %c0_i32_0 : i32, i32
  }
  func.func @transform_4(%arg0: i32) -> (i32, i32) {
    %c0_i32 = arith.constant 0 : i32
    %c0_i32_0 = arith.constant 0 : i32
    %c0_i32_1 = arith.constant 0 : i32
    return %c0_i32, %c0_i32_0 : i32, i32
  }
  func.func @transform_5(%arg0: i32) -> (i32, i32) {
    %c0_i32 = arith.constant 0 : i32
    %c0_i32_0 = arith.constant 0 : i32
    %c0_i32_1 = arith.constant 0 : i32
    return %c0_i32, %c0_i32_0 : i32, i32
  }
  func.func @transform_6(%arg0: i32) -> (i32, i32) {
    %c0_i32 = arith.constant 0 : i32
    %c0_i32_0 = arith.constant 0 : i32
    %c0_i32_1 = arith.constant 0 : i32
    return %c0_i32, %c0_i32_0 : i32, i32
  }
}

</mosaic_0001>

<bundles_post_ra>
// kernel: question_coding_elbo.1
= control target key start
LH: loop header
LB: loop body
LE: loop exit
PB: predicated region body
PF: predicated region fallthrough
CT: control target
= control target key end

     0   :  { %s1572_s0 = inlined_call_operand.hbm [shape: s32[8,8], index: 0, kind: input, shape index: {}]   ;;  %s1573_s1 = inlined_call_operand.<no memory space> [shape: f32[1,1], index: 1, kind: input, shape index: {}]   ;;  %s1574_s2 = inlined_call_operand.hbm [shape: bf16[128,128], index: 2, kind: input, shape index: {}]   ;;  %s1575_s3 = inlined_call_operand.hbm [shape: bf16[128,128], index: 3, kind: input, shape index: {}]   ;;  %s1576_s4 = inlined_call_operand.hbm [shape: bf16[128,256], index: 4, kind: input, shape index: {}]   ;;  %s1577_s5 = inlined_call_operand.hbm [shape: bf16[256,256], index: 5, kind: input, shape index: {}]   ;;  %s1578_s6 = inlined_call_operand.vmem [shape: f32[8,128], index: 6, kind: output, shape index: {}]  }
   0x1   :  { %v11_v0 = vstv %s1573_s1 }
   0x2   :  { %12 = vst [vmem:[#allocation2] sm:$0x1] %v11_v0 }
   0x3   :  { %13 = vsyncpa [#allocation4], 0 }
   0x4   :  { %14 = vsyncpa [#allocation6], 0  ;;  %s33_s25 = sshll.u32 %s1574_s2, 4  ;;  %s34_s25 = int_to_ptr.hbm [resolvable:$true] %s33_s25 }
   0x5   :  { %15 = vsyncpa [#allocation9], 0  ;;  %s1429_s26 = smov [#allocation5]   ;;  %s59_s30 = sshll.u32 %s1576_s4, 4  ;;  %s60_s30 = int_to_ptr.hbm [resolvable:$true] %s59_s30 }
   0x6   :  { %s35_s27 = sshll.u32 %s1429_s26, 4  ;;  %s1430_s7 = smov 64   ;;  %s36_s27 = int_to_ptr.vmem [resolvable:$true] %s35_s27 }
   0x7   :  { %s1431_s8 = smov 4   ;;  %s1432_s1 = smov [#allocation8]  }
   0x8   :  { %41 = dma.hbm_to_vmem [thread:$0]  %s34_s25, 1024, %s36_s27, [#allocation6], %s1430_s7, %s1430_s7, %s1431_s8  }
   0x9   :  { %s61_s9 = sshll.u32 %s1432_s1, 4  ;;  %s1433_s10 = smov 128   ;;  %s62_s9 = int_to_ptr.vmem [resolvable:$true] %s61_s9 }
   0xa   :  { %s1434_s11 = smov 8   ;;  %s21_s13 = sshll.u32 %s1572_s0, 4  ;;  %s22_s13 = int_to_ptr.hbm [resolvable:$true] %s21_s13 }
   0xb   :  { %67 = dma.hbm_to_vmem [thread:$0]  %s60_s30, 2048, %s62_s9, [#allocation9], %s1433_s10, %s1433_s10, %s1434_s11  }
   0xc   :  { %s1435_s14 = smov [#allocation3]   ;;  %s46_s17 = sshll.u32 %s1575_s3, 4  ;;  %s47_s17 = int_to_ptr.hbm [resolvable:$true] %s46_s17 }
   0xd   :  { %s23_s15 = sshll.u32 %s1435_s14, 4  ;;  %s1436_s18 = smov [#allocation7]   ;;  %s24_s15 = int_to_ptr.vmem [resolvable:$true] %s23_s15 }
   0xe   :  { %26 = dma.hbm_to_vmem [thread:$0]  %s22_s13, 128, %s24_s15, [#allocation4]  }
   0xf   :  { %s48_s19 = sshll.u32 %s1436_s18, 4  ;;  %s72_s22 = sshll.u32 %s1577_s5, 4  ;;  %s49_s19 = int_to_ptr.vmem [resolvable:$true] %s48_s19  ;;  %s73_s22 = int_to_ptr.hbm [resolvable:$true] %s72_s22 }
  0x10   :  { %54 = dma.hbm_to_vmem [thread:$0]  %s47_s17, 1024, %s49_s19, [#allocation6], %s1430_s7, %s1430_s7, %s1431_s8  }
  0x11   :  { %s1437_s0 = smov [#allocation10]  }
  0x12   :  { %s74_s23 = sshll.u32 %s1437_s0, 4  ;;  %s75_s23 = int_to_ptr.vmem [resolvable:$true] %s74_s23 }
  0x13   :  { %80 = dma.hbm_to_vmem [thread:$0]  %s73_s22, 4096, %s75_s23, [#allocation9], %s1433_s10, %s1433_s10, %s1434_s11  }
  0x14   :  { %1423 = dma.done.wait [#allocation4], 128  }
  0x15   :  { %1424 = vsyncadd [#allocation4], 4294967168 }
  0x16   :  { %1425 = dma.done.wait [#allocation6], 2048  }
  0x17   :  { %1426 = vsyncadd [#allocation6], 4294965248 }
  0x18   :  { %1427 = dma.done.wait [#allocation9], 6144  }
  0x19   :  { %1428 = vsyncadd [#allocation9], 4294961152  ;;  %v1438_v1 = vmov 0   ;;  %v1439_v2 = vmov 2   ;;  %v1440_v3 = vmov 4   ;;  %v103_v4 = vld [vmem:[#allocation3] sm:$0xff]  ;;  %v101_v20 = vlaneseq }
  0x1a   :  { %1279 = vset.pattern.permute.xlu0 %v1438_v1  ;;  %1281 = vset.pattern.permute.xlu1 %v1439_v2  ;;  %v1204_v5 = vld [vmem:[#allocation5 + $0x38] sm:$0xff]  ;;  %v1441_v6 = vmov 1   ;;  %v1442_v7 = vmov 3   ;;  %v1443_v8 = vmov 5   ;;  %v1444_v9 = vmov 6   ;;  %v1203_v11 = vld [vmem:[#allocation5 + $0x30] sm:$0xff] }
  0x1b   :  { %1283 = vset.pattern.permute.xlu2 %v1440_v3  ;;  %105 = vperm.xlu0 %1279, %v103_v4   ;;  %v1445_v10 = vmov 7   ;;  %v1202_v12 = vld [vmem:[#allocation5 + $0x28] sm:$0xff]  ;;  %v1201_v13 = vld [vmem:[#allocation5 + $0x20] sm:$0xff]  ;;  %v1200_v14 = vld [vmem:[#allocation5 + $0x18] sm:$0xff]  ;;  %v1501_v24 = vand.u32 127, %v101_v20  ;;  %v1446_v30 = vmov 0.0  }
  0x1c   :  { %119 = vperm.xlu1 %1281, %v103_v4   ;;  %133 = vperm.xlu2 %1283, %v103_v4   ;;  %v1199_v15 = vld [vmem:[#allocation5 + $0x10] sm:$0xff]  ;;  %v1198_v16 = vld [vmem:[#allocation5 + $0x8] sm:$0xff]  ;;  %v1197_v17 = vld [vmem:[#allocation5] sm:$0xff] }
  0x1d   :  { %226 = vmatpush.bf16.msra.mxu0 %v1204_v5  ;;  %v1212_v19 = vld [vmem:[#allocation7 + $0x38] sm:$0xff]  ;;  %v1211_v23 = vld [vmem:[#allocation7 + $0x30] sm:$0xff]  ;;  %v1210_v25 = vld [vmem:[#allocation7 + $0x28] sm:$0xff] }
  0x1e   :  { %304 = vmatpush.bf16.msra.mxu1 %v1212_v19  ;;  %v1209_v27 = vld [vmem:[#allocation7 + $0x20] sm:$0xff]  ;;  %v1208_v34 = vld [vmem:[#allocation7 + $0x18] sm:$0xff]  ;;  %v1207_v40 = vld [vmem:[#allocation7 + $0x10] sm:$0xff] }
  0x1f   :  { %v1206_v47 = vld [vmem:[#allocation7 + $0x8] sm:$0xff]  ;;  %v1205_v53 = vld [vmem:[#allocation7] sm:$0xff]  ;;  %v1063_v2 = vld [vmem:[#allocation8 + $0x70] sm:$0xf] }
  0x20   :  { %v1228_v3 = vld [vmem:[#allocation8 + $0x74] sm:$0xf0] }
  0x21   :  { %227 = vmatpush.bf16.msra.mxu0 %v1203_v11  ;;  %v1064_v5 = vor.u32 %v1228_v3, %v1063_v2  ;;  %v1224_v19 = vld [vmem:[#allocation8 + $0x54] sm:$0xf0]  ;;  %v1243_v3 = vld [vmem:[#allocation10 + $0x74] sm:$0xf] }
  0x22   :  { %305 = vmatpush.bf16.msra.mxu1 %v1211_v23  ;;  %v1049_v23 = vld [vmem:[#allocation8 + $0x58] sm:$0xf0]  ;;  %v1260_v2 = vld [vmem:[#allocation10 + $0xf4] sm:$0xf0] }
  0x23   :  { %1280 = vset.pattern.permute.xlu0 %v1441_v6  ;;  %v1065_v6 = vld [vmem:[#allocation8 + $0x78] sm:$0xf0]  ;;  %510 = vmatpush.bf16.msra.mxu2 %v1064_v5 }
  0x24   :  { %1282 = vset.pattern.permute.xlu1 %v1442_v7  ;;  %112 = vperm.xlu0 %1280, %v103_v4  }
  0x25   :  { %126 = vperm.xlu1 %1282, %v103_v4   ;;  %1284 = vset.pattern.permute.xlu2 %v1443_v8 }
  0x26   :  { %140 = vperm.xlu2 %1284, %v103_v4   ;;  %228 = vmatpush.bf16.msra.mxu0 %v1202_v12  ;;  %v1055_v12 = vld [vmem:[#allocation8 + $0x60] sm:$0xf] }
  0x27   :  { %306 = vmatpush.bf16.msra.mxu1 %v1210_v25  ;;  %v1039_v25 = vld [vmem:[#allocation8 + $0x40] sm:$0xf] }
  0x2a   :  { %229 = vmatpush.bf16.msra.mxu0 %v1201_v13  ;;  %v1226_v13 = vld [vmem:[#allocation8 + $0x64] sm:$0xf0] }
  0x2b   :  { %307 = vmatpush.bf16.msra.mxu1 %v1209_v27 }
  0x2c   :  { %1289 = vset.pattern.permute.xlu0 %v1438_v1 }
  0x2d   :  { %1285 = vset.pattern.permute.xlu1 %v1444_v9 }
  0x2e   :  { %147 = vperm.xlu1 %1285, %v103_v4   ;;  %1286 = vset.pattern.permute.xlu2 %v1445_v10 }
  0x2f   :  { %154 = vperm.xlu2 %1286, %v103_v4   ;;  %230 = vmatpush.bf16.msra.mxu0 %v1200_v14  ;;  %v1227_v4 = vld [vmem:[#allocation8 + $0x74] sm:$0xf]  ;;  %v1225_v14 = vld [vmem:[#allocation8 + $0x64] sm:$0xf] }
  0x30   :  { %308 = vmatpush.bf16.msra.mxu1 %v1208_v34  ;;  %v1068_v7 = vor.u32 %v1227_v4, %v1065_v6  ;;  %v1220_v34 = vld [vmem:[#allocation8 + $0x34] sm:$0xf0]  ;;  %v1129_v4 = vld [vmem:[#allocation10 + $0x78] sm:$0xf0] }
  0x32   :  { %523 = vmatpush.bf16.msra.mxu3 %v1068_v7  ;;  %v1132_v7 = vor.u32 %v1243_v3, %v1129_v4 }
  0x33   :  { %231 = vmatpush.bf16.msra.mxu0 %v1199_v15  ;;  %v1056_v15 = vor.u32 %v1226_v13, %v1055_v12 }
  0x34   :  { %309 = vmatpush.bf16.msra.mxu1 %v1207_v40  ;;  %v1218_v40 = vld [vmem:[#allocation8 + $0x24] sm:$0xf0] }
  0x35   :  { %511 = vmatpush.bf16.msra.mxu2 %v1056_v15  ;;  %v1258_v15 = vld [vmem:[#allocation10 + $0xe4] sm:$0xf0] }
  0x36   :  { %1287 = vset.pattern.permute.xlu1 %v1438_v1 }
  0x37   :  { %1288 = vset.pattern.permute.xlu2 %v1438_v1  ;;  %232 = vmatpush.bf16.msra.mxu0 %v1198_v16  ;;  %v1057_v16 = vld [vmem:[#allocation8 + $0x68] sm:$0xf0] }
  0x38   :  { %310 = vmatpush.bf16.msra.mxu1 %v1206_v47  ;;  %v1215_v47 = vld [vmem:[#allocation8 + $0x14] sm:$0xf] }
  0x3b   :  { %233 = vmatpush.bf16.msra.mxu0 %v1197_v17  ;;  %v1060_v17 = vor.u32 %v1225_v14, %v1057_v16  ;;  %v1183_v14 = vld [vmem:[#allocation10 + $0xe0] sm:$0xf] }
  0x3c   :  { %311 = vmatpush.bf16.msra.mxu1 %v1205_v53  ;;  %v1214_v53 = vld [vmem:[#allocation8 + $0x4] sm:$0xf0] }
  0x3d   :  { %524 = vmatpush.bf16.msra.mxu3 %v1060_v17  ;;  %v1184_v17 = vor.u32 %v1258_v15, %v1183_v14 }
  0x76   :  { %v134_v18 = vpop.permute.xlu2 %133 }
  0x77   :  { %vm135_vm4 = vcmp.eq.s32.totalorder %v1501_v24, %v134_v18  ;;  %v1047_v18 = vld [vmem:[#allocation8 + $0x50] sm:$0xf] }
  0x78   :  { %v921_v41 = vsel %vm135_vm4, 1.0, %v1446_v30 }
  0x80   :  { %v141_v26 = vpop.permute.xlu2 %140 }
  0x81   :  { %vm142_vm5 = vcmp.eq.s32.totalorder %v1501_v24, %v141_v26  ;;  %v1222_v26 = vld [vmem:[#allocation8 + $0x44] sm:$0xf0] }
  0x82   :  { %v922_v44 = vsel %vm142_vm5, 1.0, %v1446_v30 }
  0x89   :  { %v155_v38 = vpop.permute.xlu2 %154 }
  0x8a   :  { %vm156_vm6 = vcmp.eq.s32.totalorder %v1501_v24, %v155_v38 }
  0x8b   :  { %v924_v48 = vsel %vm156_vm6, 1.0, %v1446_v30 }
  0x8d   :  { %v106_v21 = vpop.permute.xlu0 %105 }
  0x8e   :  { %v120_v22 = vpop.permute.xlu1 %119  ;;  %vm107_vm0 = vcmp.eq.s32.totalorder %v1501_v24, %v106_v21  ;;  %v1223_v21 = vld [vmem:[#allocation8 + $0x54] sm:$0xf] }
  0x8f   :  { %vm121_vm1 = vcmp.eq.s32.totalorder %v1501_v24, %v120_v22  ;;  %v917_v31 = vsel %vm107_vm0, 1.0, %v1446_v30  ;;  %v1048_v22 = vor.u32 %v1224_v19, %v1047_v18  ;;  %v1052_v27 = vor.u32 %v1223_v21, %v1049_v23  ;;  %v1241_v18 = vld [vmem:[#allocation10 + $0x64] sm:$0xf]  ;;  %v1121_v19 = vld [vmem:[#allocation10 + $0x68] sm:$0xf0] }
  0x90   :  { %v919_v35 = vsel %vm121_vm1, 1.0, %v1446_v30  ;;  %v1257_v21 = vld [vmem:[#allocation10 + $0xe4] sm:$0xf] }
  0x91   :  { %512 = vmatpush.bf16.msra.mxu2 %v1048_v22  ;;  %525 = vmatpush.bf16.msra.mxu3 %v1052_v27  ;;  %v1111_v27 = vld [vmem:[#allocation10 + $0x50] sm:$0xf] }
  0x96   :  { %v113_v28 = vpop.permute.xlu0 %112 }
  0x97   :  { %v127_v29 = vpop.permute.xlu1 %126  ;;  %vm114_vm2 = vcmp.eq.s32.totalorder %v1501_v24, %v113_v28  ;;  %v1221_v28 = vld [vmem:[#allocation8 + $0x44] sm:$0xf] }
  0x98   :  { %v918_v32 = vsel %vm114_vm2, 1.0, %v1446_v30  ;;  %vm128_vm3 = vcmp.eq.s32.totalorder %v1501_v24, %v127_v29  ;;  %v1041_v29 = vld [vmem:[#allocation8 + $0x48] sm:$0xf0] }
  0x99   :  { %v117_v33 = vadd.f32 %v918_v32, %v917_v31  ;;  %v920_v37 = vsel %vm128_vm3, 1.0, %v1446_v30  ;;  %v1040_v31 = vor.u32 %v1222_v26, %v1039_v25  ;;  %v1044_v32 = vor.u32 %v1221_v28, %v1041_v29  ;;  %v1185_v26 = vld [vmem:[#allocation10 + $0xe8] sm:$0xf0]  ;;  %v1240_v28 = vld [vmem:[#allocation10 + $0x54] sm:$0xf0] }
  0x9a   :  { %v1124_v25 = vor.u32 %v1241_v18, %v1121_v19  ;;  %v1188_v29 = vor.u32 %v1257_v21, %v1185_v26 }
  0x9b   :  { %v124_v36 = vadd.f32 %v919_v35, %v117_v33  ;;  %v1031_v33 = vld [vmem:[#allocation8 + $0x30] sm:$0xf]  ;;  %v1219_v35 = vld [vmem:[#allocation8 + $0x34] sm:$0xf]  ;;  %513 = vmatpush.bf16.msra.mxu2 %v1040_v31  ;;  %526 = vmatpush.bf16.msra.mxu3 %v1044_v32  ;;  %v1112_v31 = vor.u32 %v1240_v28, %v1111_v27  ;;  %v1238_v27 = vld [vmem:[#allocation10 + $0x44] sm:$0xf0] }
  0x9c   :  { %v1167_v28 = vld [vmem:[#allocation10 + $0xc0] sm:$0xf] }
  0x9d   :  { %v131_v39 = vadd.f32 %v920_v37, %v124_v36  ;;  %v1033_v36 = vld [vmem:[#allocation8 + $0x38] sm:$0xf0]  ;;  %v1032_v37 = vor.u32 %v1220_v34, %v1031_v33 }
  0x9e   :  { %v1036_v38 = vor.u32 %v1219_v35, %v1033_v36 }
  0x9f   :  { %v138_v42 = vadd.f32 %v921_v41, %v131_v39  ;;  %v1023_v39 = vld [vmem:[#allocation8 + $0x20] sm:$0xf]  ;;  %v1217_v41 = vld [vmem:[#allocation8 + $0x24] sm:$0xf]  ;;  %514 = vmatpush.bf16.msra.mxu2 %v1032_v37 }
  0xa0   :  { %v148_v43 = vpop.permute.xlu1 %147  ;;  %527 = vmatpush.bf16.msra.mxu3 %v1036_v38 }
  0xa1   :  { %vm149_vm7 = vcmp.eq.s32.totalorder %v1501_v24, %v148_v43  ;;  %v145_v45 = vadd.f32 %v922_v44, %v138_v42  ;;  %v1025_v42 = vld [vmem:[#allocation8 + $0x28] sm:$0xf0]  ;;  %v1024_v43 = vor.u32 %v1218_v40, %v1023_v39 }
  0xa2   :  { %v923_v46 = vsel %vm149_vm7, 1.0, %v1446_v30  ;;  %v1028_v44 = vor.u32 %v1217_v41, %v1025_v42 }
  0xa3   :  { %v152_v49 = vadd.f32 %v923_v46, %v145_v45  ;;  %v1015_v45 = vld [vmem:[#allocation8 + $0x10] sm:$0xf]  ;;  %v1216_v46 = vld [vmem:[#allocation8 + $0x14] sm:$0xf0]  ;;  %515 = vmatpush.bf16.msra.mxu2 %v1024_v43 }
  0xa4   :  { %528 = vmatpush.bf16.msra.mxu3 %v1028_v44 }
  0xa5   :  { %v1519_v50 = vadd.f32 %v924_v48, %v152_v49  ;;  %v1017_v48 = vld [vmem:[#allocation8 + $0x18] sm:$0xf0]  ;;  %v1016_v49 = vor.u32 %v1216_v46, %v1015_v45 }
  0xa7   :  { %v160_v51 = vmul.f32 0.125, %v1519_v50  ;;  %516 = vmatpush.bf16.msra.mxu2 %v1016_v49 }
  0xa9   :  { %v161_v52 = vpack.c.bf16 %v160_v51, %v160_v51  ;;  %v1020_v51 = vor.u32 %v1215_v47, %v1017_v48  ;;  %v1175_v47 = vld [vmem:[#allocation10 + $0xd0] sm:$0xf]  ;;  %v1256_v48 = vld [vmem:[#allocation10 + $0xd4] sm:$0xf0] }
  0xab   :  { %234 = vmatmul.bf16.vlgmr.msra.gmra.mxu0 %v161_v52  ;;  %v1007_v52 = vld [vmem:[#allocation8] sm:$0xf]  ;;  %529 = vmatpush.bf16.msra.mxu3 %v1020_v51 }
 0x128   :  { %v235_v54 = vpop.f32.mrf.mxu0 }
 0x129   :  { %v239_v55 = vpack.c.bf16 %v235_v54, %v235_v54  ;;  %v1213_v54 = vld [vmem:[#allocation8 + $0x4] sm:$0xf] }
 0x12b   :  { %312 = vmatmul.bf16.vlgmr.msra.gmra.mxu1 %v239_v55  ;;  %v1009_v55 = vld [vmem:[#allocation8 + $0x8] sm:$0xf0] }
 0x130   :  { %v237_v56 = vpop.f32.mrf.mxu0 }
 0x131   :  { %v1008_v56 = vor.u32 %v1214_v53, %v1007_v52  ;;  %v1239_v53 = vld [vmem:[#allocation10 + $0x54] sm:$0xf] }
 0x133   :  { %517 = vmatpush.bf16.msra.mxu2 %v1008_v56 }
 0x137   :  { %756 = vmatpush.bf16.msrb.mxu2 %v1132_v7 }
 0x13b   :  { %757 = vmatpush.bf16.msrb.mxu2 %v1124_v25 }
 0x1a8   :  { %v1522_v57 = vpop.f32.mrf.mxu1 }
 0x1a9   :  { %317 = vmax.xlane.f32.xlu0 %v1522_v57 }
 0x1b0   :  { %v315_v58 = vpop.f32.mrf.mxu1 }
 0x1b1   :  { %v1012_v58 = vor.u32 %v1213_v54, %v1009_v55  ;;  %v1113_v54 = vld [vmem:[#allocation10 + $0x58] sm:$0xf0] }
 0x1b2   :  { %v1116_v3 = vor.u32 %v1239_v53, %v1113_v54  ;;  %v1250_v53 = vld [vmem:[#allocation10 + $0xa4] sm:$0xf0]  ;;  %v1233_v54 = vld [vmem:[#allocation10 + $0x24] sm:$0xf] }
 0x1b3   :  { %530 = vmatpush.bf16.msra.mxu3 %v1012_v58 }
 0x1b4   :  { %758 = vmatpush.bf16.msrb.mxu2 %v1116_v3  ;;  %v1248_v3 = vld [vmem:[#allocation10 + $0x94] sm:$0xf0] }
 0x21c   :  { %v1525_v59 = vpop.xlane.xlu0 %317 }
 0x21d   :  { %v319_v60 = vsub.f32 %v1522_v57, %v1525_v59  ;;  %vm328_vm8 = vcmp.ge.f32.partialorder %v1522_v57, %v1525_v59 }
 0x21e   :  { %v329_v61 = vsel %vm328_vm8, %v1501_v24, 128 }
 0x21f   :  { %v331_v62 = vshra.s32 %v329_v61, 16  ;;  %v320_v63 = vmul.f32 1.442695, %v319_v60  ;;  %v330_v8 = vand.u32 65535, %v329_v61 }
 0x221   :  { %v333_v0 = vcvt.s32.f32 %v331_v62  ;;  %1291 = vpow2.f32 %v320_v63  ;;  %v332_v10 = vcvt.s32.f32 %v330_v8  ;;  %v1127_v62 = vld [vmem:[#allocation10 + $0x70] sm:$0xf]  ;;  %v1244_v63 = vld [vmem:[#allocation10 + $0x74] sm:$0xf0]  ;;  %v1259_v8 = vld [vmem:[#allocation10 + $0xf4] sm:$0xf] }
 0x223   :  { %334 = vmin.xlane.f32.xlu1 %v333_v0 }
 0x227   :  { %v1292_v1 = vpop.eup %1291 }
 0x22b   :  { %322 = vadd.xlane.f32.xlu1 %v1292_v1  ;;  %v1128_v1 = vor.u32 %v1244_v63, %v1127_v62 }
 0x22d   :  { %730 = vmatpush.bf16.msrb.mxu0 %v1128_v1 }
 0x296   :  { %v335_v9 = vpop.xlane.xlu1 %334 }
 0x297   :  { %vm336_vm9 = vcmp.eq.f32.partialorder %v333_v0, %v335_v9  ;;  %v341_v60 = vcvt.f32.s32 %v335_v9  ;;  %v1191_v0 = vld [vmem:[#allocation10 + $0xf0] sm:$0xf]  ;;  %v1242_v9 = vld [vmem:[#allocation10 + $0x64] sm:$0xf0] }
 0x298   :  { %v337_v11 = vsel %vm336_vm9, %v332_v10, inf  ;;  %v1192_v6 = vor.u32 %v1260_v2, %v1191_v0  ;;  %v1193_v10 = vld [vmem:[#allocation10 + $0xf8] sm:$0xf0]  ;;  %v1176_v2 = vor.u32 %v1256_v48, %v1175_v47  ;;  %v1087_v48 = vld [vmem:[#allocation10 + $0x20] sm:$0xf] }
 0x299   :  { %338 = vmin.xlane.f32.xlu2 %v337_v11  ;;  %v342_v61 = vshll.u32 %v341_v60, 16  ;;  %v1119_v11 = vld [vmem:[#allocation10 + $0x60] sm:$0xf]  ;;  %v1196_v13 = vor.u32 %v1259_v8, %v1193_v10  ;;  %v1255_v60 = vld [vmem:[#allocation10 + $0xd4] sm:$0xf] }
 0x29a   :  { %743 = vmatpush.bf16.msrb.mxu1 %v1192_v6  ;;  %v1120_v16 = vor.u32 %v1242_v9, %v1119_v11  ;;  %v1161_v47 = vld [vmem:[#allocation10 + $0xb8] sm:$0xf0] }
 0x29b   :  { %769 = vmatpush.bf16.msrb.mxu3 %v1196_v13 }
 0x29c   :  { %731 = vmatpush.bf16.msrb.mxu0 %v1120_v16 }
 0x29e   :  { %v323_v22 = vpop.xlane.xlu1 %322  ;;  %744 = vmatpush.bf16.msrb.mxu1 %v1184_v17 }
 0x29f   :  { %1293 = vlog2.f32 %v323_v22  ;;  %770 = vmatpush.bf16.msrb.mxu3 %v1188_v29 }
 0x2a0   :  { %732 = vmatpush.bf16.msrb.mxu0 %v1112_v31  ;;  %v1254_v31 = vld [vmem:[#allocation10 + $0xc4] sm:$0xf0] }
 0x2a2   :  { %745 = vmatpush.bf16.msrb.mxu1 %v1176_v2 }
 0x2a5   :  { %v1294_v55 = vpop.eup %1293 }
 0x2a6   :  { %v325_v8 = vmul.f32 0.6931472, %v1294_v55 }
 0x2a8   :  { %v326_v15 = vadd.f32 %v325_v8, %v1525_v59  ;;  %v1103_v59 = vld [vmem:[#allocation10 + $0x40] sm:$0xf] }
 0x2a9   :  { %v1104_v29 = vor.u32 %v1238_v27, %v1103_v59 }
 0x2aa   :  { %v327_v21 = vsub.f32 %v1522_v57, %v326_v15  ;;  %v1253_v57 = vld [vmem:[#allocation10 + $0xc4] sm:$0xf]  ;;  %v1246_v15 = vld [vmem:[#allocation10 + $0x84] sm:$0xf0] }
 0x2ab   :  { %733 = vmatpush.bf16.msrb.mxu0 %v1104_v29 }
 0x30c   :  { %v339_v5 = vpop.xlane.xlu2 %338 }
 0x30d   :  { %v340_v12 = vcvt.f32.s32 %v339_v5 }
 0x30f   :  { %v343_v23 = vadd.s32 %v342_v61, %v340_v12  ;;  %v1177_v61 = vld [vmem:[#allocation10 + $0xd8] sm:$0xf0] }
 0x310   :  { %v1180_v7 = vor.u32 %v1255_v60, %v1177_v61  ;;  %v1153_v60 = vld [vmem:[#allocation10 + $0xa8] sm:$0xf0] }
 0x311   :  { %vm344_vm10 = vcmp.ge.s32.totalorder %v343_v23, 128  ;;  %v989_v32 = vadd.s32 4294967168, %v343_v23  ;;  %v351_v33 = vadd.s32 1, %v343_v23  ;;  %v359_v34 = vadd.s32 2, %v343_v23 }
 0x312   :  { %v367_v35 = vadd.s32 3, %v343_v23  ;;  %v375_v36 = vadd.s32 4, %v343_v23  ;;  %v383_v37 = vadd.s32 5, %v343_v23  ;;  %v391_v44 = vadd.s32 6, %v343_v23  ;;  %771 = vmatpush.bf16.msrb.mxu3 %v1180_v7  ;;  %v1145_v7 = vld [vmem:[#allocation10 + $0x98] sm:$0xf0] }
 0x313   :  { %v346_v38 = vsel %vm344_vm10, %v989_v32, %v343_v23  ;;  %vm352_vm11 = vcmp.ge.s32.totalorder %v351_v33, 128  ;;  %v991_v39 = vadd.s32 4294967168, %v351_v33  ;;  %vm360_vm12 = vcmp.ge.s32.totalorder %v359_v34, 128  ;;  %v1237_v32 = vld [vmem:[#allocation10 + $0x44] sm:$0xf] }
 0x314   :  { %vm347_vm13 = vcmp.eq.s32.totalorder %v1501_v24, %v346_v38  ;;  %v993_v40 = vadd.s32 4294967168, %v359_v34  ;;  %vm368_vm14 = vcmp.ge.s32.totalorder %v367_v35, 128  ;;  %v995_v41 = vadd.s32 4294967168, %v367_v35  ;;  %v1236_v38 = vld [vmem:[#allocation10 + $0x34] sm:$0xf0] }
 0x315   :  { %v354_v42 = vsel %vm352_vm11, %v991_v39, %v351_v33  ;;  %vm376_vm15 = vcmp.ge.s32.totalorder %v375_v36, 128  ;;  %v997_v43 = vadd.s32 4294967168, %v375_v36  ;;  %v990_v49 = vsel %vm347_vm13, 1.0, %v1446_v30  ;;  %v1105_v33 = vld [vmem:[#allocation10 + $0x48] sm:$0xf0] }
 0x316   :  { %vm355_vm0 = vcmp.eq.s32.totalorder %v1501_v24, %v354_v42  ;;  %v362_v45 = vsel %vm360_vm12, %v993_v40, %v359_v34  ;;  %v370_v46 = vsel %vm368_vm14, %v995_v41, %v367_v35  ;;  %vm384_vm3 = vcmp.ge.s32.totalorder %v383_v37, 128  ;;  %v1169_v35 = vld [vmem:[#allocation10 + $0xc8] sm:$0xf0]  ;;  %v1159_v39 = vld [vmem:[#allocation10 + $0xb0] sm:$0xf] }
 0x317   :  { %v992_v51 = vsel %vm355_vm0, 1.0, %v1446_v30  ;;  %vm363_vm1 = vcmp.eq.s32.totalorder %v1501_v24, %v362_v45  ;;  %v378_v52 = vsel %vm376_vm15, %v997_v43, %v375_v36  ;;  %vm371_vm2 = vcmp.eq.s32.totalorder %v1501_v24, %v370_v46  ;;  %v1095_v36 = vld [vmem:[#allocation10 + $0x30] sm:$0xf]  ;;  %v1252_v40 = vld [vmem:[#allocation10 + $0xb4] sm:$0xf0] }
 0x318   :  { %v358_v56 = vadd.f32 %v992_v51, %v990_v49  ;;  %v994_v58 = vsel %vm363_vm1, 1.0, %v1446_v30  ;;  %vm379_vm4 = vcmp.eq.s32.totalorder %v1501_v24, %v378_v52  ;;  %v999_v62 = vadd.s32 4294967168, %v383_v37  ;;  %v1235_v43 = vld [vmem:[#allocation10 + $0x34] sm:$0xf]  ;;  %v1234_v49 = vld [vmem:[#allocation10 + $0x24] sm:$0xf0] }
 0x319   :  { %vm392_vm5 = vcmp.ge.s32.totalorder %v391_v44, 128  ;;  %v1001_v63 = vadd.s32 4294967168, %v391_v44  ;;  %v399_v1 = vadd.s32 7, %v343_v23  ;;  %v996_v4 = vsel %vm371_vm2, 1.0, %v1446_v30  ;;  %v1251_v45 = vld [vmem:[#allocation10 + $0xb4] sm:$0xf] }
 0x31a   :  { %v366_v0 = vadd.f32 %v994_v58, %v358_v56  ;;  %v386_v5 = vsel %vm384_vm3, %v999_v62, %v383_v37  ;;  %v998_v11 = vsel %vm379_vm4, 1.0, %v1446_v30  ;;  %v1108_v34 = vor.u32 %v1237_v32, %v1105_v33  ;;  %v1151_v52 = vld [vmem:[#allocation10 + $0xa0] sm:$0xf]  ;;  %v1089_v56 = vld [vmem:[#allocation10 + $0x28] sm:$0xf0] }
 0x31b   :  { %v394_v6 = vsel %vm392_vm5, %v1001_v63, %v391_v44  ;;  %vm387_vm6 = vcmp.eq.s32.totalorder %v1501_v24, %v386_v5  ;;  %vm400_vm7 = vcmp.ge.s32.totalorder %v399_v1, 128  ;;  %v1003_v12 = vadd.s32 4294967168, %v399_v1  ;;  %v1097_v44 = vld [vmem:[#allocation10 + $0x38] sm:$0xf0]  ;;  %v1249_v58 = vld [vmem:[#allocation10 + $0xa4] sm:$0xf] }
 0x31c   :  { %v374_v10 = vadd.f32 %v996_v4, %v366_v0  ;;  %vm395_vm8 = vcmp.eq.s32.totalorder %v1501_v24, %v394_v6  ;;  %v1000_v9 = vsel %vm387_vm6, 1.0, %v1446_v30  ;;  %v1172_v37 = vor.u32 %v1253_v57, %v1169_v35  ;;  %759 = vmatpush.bf16.msrb.mxu2 %v1108_v34  ;;  %v1079_v63 = vld [vmem:[#allocation10 + $0x10] sm:$0xf]  ;;  %v1232_v0 = vld [vmem:[#allocation10 + $0x14] sm:$0xf0] }
 0x31d   :  { %v402_v14 = vsel %vm400_vm7, %v1003_v12, %v399_v1  ;;  %v1002_v17 = vsel %vm395_vm8, 1.0, %v1446_v30  ;;  %v1096_v41 = vor.u32 %v1236_v38, %v1095_v36  ;;  %v1160_v42 = vor.u32 %v1252_v40, %v1159_v39  ;;  %v1143_v1 = vld [vmem:[#allocation10 + $0x90] sm:$0xf]  ;;  %v1231_v4 = vld [vmem:[#allocation10 + $0x14] sm:$0xf] }
 0x31e   :  { %v382_v13 = vadd.f32 %v998_v11, %v374_v10  ;;  %vm403_vm9 = vcmp.eq.s32.totalorder %v1501_v24, %v402_v14  ;;  %772 = vmatpush.bf16.msrb.mxu3 %v1172_v37  ;;  %v1100_v46 = vor.u32 %v1235_v43, %v1097_v44  ;;  %v1164_v51 = vor.u32 %v1251_v45, %v1161_v47  ;;  %v1081_v5 = vld [vmem:[#allocation10 + $0x18] sm:$0xf0]  ;;  %v1247_v6 = vld [vmem:[#allocation10 + $0x94] sm:$0xf]  ;;  %v1071_v12 = vld [vmem:[#allocation10] sm:$0xf] }
 0x31f   :  { %v1004_v19 = vsel %vm403_vm9, 1.0, %v1446_v30  ;;  %v1168_v30 = vor.u32 %v1254_v31, %v1167_v28  ;;  %734 = vmatpush.bf16.msrb.mxu0 %v1096_v41  ;;  %v1088_v55 = vor.u32 %v1234_v49, %v1087_v48  ;;  %v1152_v61 = vor.u32 %v1250_v53, %v1151_v52 }
 0x320   :  { %v390_v16 = vadd.f32 %v1000_v9, %v382_v13  ;;  %760 = vmatpush.bf16.msrb.mxu2 %v1100_v46  ;;  %v1092_v62 = vor.u32 %v1233_v54, %v1089_v56  ;;  %v1156_v2 = vor.u32 %v1249_v58, %v1153_v60  ;;  %v1080_v8 = vor.u32 %v1232_v0, %v1079_v63  ;;  %v1230_v13 = vld [vmem:[#allocation10 + $0x4] sm:$0xf0]  ;;  %v1135_v9 = vld [vmem:[#allocation10 + $0x80] sm:$0xf] }
 0x321   :  { %746 = vmatpush.bf16.msrb.mxu1 %v1168_v30  ;;  %v1144_v10 = vor.u32 %v1248_v3, %v1143_v1  ;;  %v1084_v11 = vor.u32 %v1231_v4, %v1081_v5  ;;  %v1148_v14 = vor.u32 %v1247_v6, %v1145_v7  ;;  %vm826_vm10 = vcmask 7168  }
 0x322   :  { %v398_v18 = vadd.f32 %v1002_v17, %v390_v16  ;;  %773 = vmatpush.bf16.msrb.mxu3 %v1164_v51  ;;  %v1229_v16 = vld [vmem:[#allocation10 + $0x4] sm:$0xf]  ;;  %v1073_v17 = vld [vmem:[#allocation10 + $0x8] sm:$0xf0]  ;;  %vm878_vm12 = vcmp.eq.s32.totalorder %v1501_v24, 0  ;;  %vm881_vm13 = vcmp.eq.s32.totalorder %v1501_v24, 1 }
 0x323   :  { %735 = vmatpush.bf16.msrb.mxu0 %v1088_v55  ;;  %vm889_vm14 = vcmp.eq.s32.totalorder %v1501_v24, 2  ;;  %vm897_vm0 = vcmp.eq.s32.totalorder %v1501_v24, 3  ;;  %vm900_vm2 = vcmp.eq.s32.totalorder %v1501_v24, 4 }
 0x324   :  { %v1552_v22 = vadd.f32 %v1004_v19, %v398_v18  ;;  %761 = vmatpush.bf16.msrb.mxu2 %v1092_v62  ;;  %v1245_v18 = vld [vmem:[#allocation10 + $0x84] sm:$0xf]  ;;  %v1137_v19 = vld [vmem:[#allocation10 + $0x88] sm:$0xf0] }
 0x325   :  { %747 = vmatpush.bf16.msrb.mxu1 %v1160_v42 }
 0x326   :  { %v407_v23 = vmul.f32 %v1552_v22, %v327_v21  ;;  %v412_v25 = vmul.f32 0.125, %v1552_v22  ;;  %774 = vmatpush.bf16.msrb.mxu3 %v1156_v2  ;;  %v1072_v21 = vor.u32 %v1230_v13, %v1071_v12  ;;  %v1290_v13 = vld [vmem:[#allocation2] ss:$0 sm:$0xff] }
 0x327   :  { %736 = vmatpush.bf16.msrb.mxu0 %v1080_v8 }
 0x328   :  { %408 = vadd.xlane.f32.xlu1 %v407_v23  ;;  %v413_v26 = vpack.c.bf16 %v412_v25, %v412_v25  ;;  %762 = vmatpush.bf16.msrb.mxu2 %v1084_v11  ;;  %v1136_v23 = vor.u32 %v1246_v15, %v1135_v9  ;;  %v1076_v25 = vor.u32 %v1229_v16, %v1073_v17 }
 0x329   :  { %748 = vmatpush.bf16.msrb.mxu1 %v1152_v61 }
 0x32a   :  { %518 = vmatmul.bf16.vlgmr.msra.gmra.mxu2 %v413_v26  ;;  %531 = vmatmul.bf16.vlgmr.msra.gmra.mxu3 %v413_v26  ;;  %v1140_v26 = vor.u32 %v1245_v18, %v1137_v19 }
 0x32b   :  { %775 = vmatpush.bf16.msrb.mxu3 %v1148_v14  ;;  %737 = vmatpush.bf16.msrb.mxu0 %v1072_v21 }
 0x32c   :  { %763 = vmatpush.bf16.msrb.mxu2 %v1076_v25 }
 0x32d   :  { %749 = vmatpush.bf16.msrb.mxu1 %v1144_v10 }
 0x32f   :  { %776 = vmatpush.bf16.msrb.mxu3 %v1140_v26 }
 0x331   :  { %750 = vmatpush.bf16.msrb.mxu1 %v1136_v23 }
 0x39b   :  { %v409_v0 = vpop.xlane.xlu1 %408 }
 0x39c   :  { %v410_v1 = vsub.f32 0.0, %v409_v0 }
 0x39e   :  { %v411_v4 = vmul.f32 0.125, %v410_v1 }
 0x3a0   :  { %v814_v8 = vsub.f32 0.0, %v411_v4 }
 0x3ad   :  { %v519_v59 = vpop.f32.mrf.mxu2  ;;  %v532_v27 = vpop.f32.mrf.mxu3 }
 0x3ae   :  { %v536_v28 = vpack.c.bf16 %v519_v59, %v519_v59  ;;  %v537_v29 = vpack.c.bf16 %v532_v27, %v532_v27 }
 0x3b0   :  { %738 = vmatmul.bf16.vlgmr.msrb.gmra.mxu0 %v536_v28  ;;  %751 = vmatmul.bf16.vlgmr.msrb.gmra.mxu1 %v537_v29 }
 0x3b1   :  { %764 = vmatmul.bf16.vlgmr.msrb.gmra.mxu2 %v536_v28  ;;  %777 = vmatmul.bf16.vlgmr.msrb.gmra.mxu3 %v537_v29 }
 0x3b5   :  { %v521_v31 = vpop.f32.mrf.mxu2  ;;  %v534_v32 = vpop.f32.mrf.mxu3 }
 0x42d   :  { %v739_v33 = vpop.f32.mrf.mxu0  ;;  %v752_v30 = vpop.f32.mrf.mxu1 }
 0x42e   :  { %v753_v34 = vadd.f32 %v752_v30, %v739_v33 }
 0x430   :  { %782 = vmax.xlane.f32.xlu0 %v753_v34 }
 0x434   :  { %v765_v57 = vpop.f32.mrf.mxu2  ;;  %v778_v35 = vpop.f32.mrf.mxu3 }
 0x435   :  { %v779_v36 = vadd.f32 %v778_v35, %v765_v57  ;;  %v741_v37 = vpop.f32.mrf.mxu0  ;;  %v754_v38 = vpop.f32.mrf.mxu1 }
 0x437   :  { %793 = vmax.xlane.f32.xlu2 %v779_v36 }
 0x43c   :  { %v767_v39 = vpop.f32.mrf.mxu2  ;;  %v780_v40 = vpop.f32.mrf.mxu3 }
 0x43d   :  { %v817_v39 = vld [vmem:[#allocation2] sm:$0x1] }
 0x4a3   :  { %v783_v41 = vpop.xlane.xlu0 %782 }
 0x4a4   :  { %v784_v42 = vsub.f32 %v753_v34, %v783_v41 }
 0x4a6   :  { %v785_v43 = vmul.f32 1.442695, %v784_v42 }
 0x4a8   :  { %1295 = vpow2.f32 %v785_v43 }
 0x4aa   :  { %v794_v44 = vpop.xlane.xlu2 %793 }
 0x4ab   :  { %v795_v45 = vsub.f32 %v779_v36, %v794_v44 }
 0x4ad   :  { %v796_v46 = vmul.f32 1.442695, %v795_v45 }
 0x4ae   :  { %v1296_v47 = vpop.eup %1295 }
 0x4af   :  { %1297 = vpow2.f32 %v796_v46  ;;  %787 = vadd.xlane.f32.xlu0 %v1296_v47 }
 0x4b5   :  { %v1298_v48 = vpop.eup %1297 }
 0x4b6   :  { %798 = vadd.xlane.f32.xlu2 %v1298_v48 }
 0x522   :  { %v788_v49 = vpop.xlane.xlu0 %787 }
 0x523   :  { %1299 = vlog2.f32 %v788_v49 }
 0x529   :  { %v1300_v51 = vpop.eup %1299  ;;  %v799_v52 = vpop.xlane.xlu2 %798 }
 0x52a   :  { %v790_v53 = vmul.f32 0.6931472, %v1300_v51  ;;  %1301 = vlog2.f32 %v799_v52 }
 0x52c   :  { %v791_v54 = vadd.f32 %v790_v53, %v783_v41 }
 0x52e   :  { %v792_v55 = vsub.f32 %v753_v34, %v791_v54 }
 0x530   :  { %v1302_v56 = vpop.eup %1301  ;;  %v804_v58 = vmul.f32 %v792_v55, %v1519_v50 }
 0x531   :  { %v801_v60 = vmul.f32 0.6931472, %v1302_v56 }
 0x532   :  { %805 = vadd.xlane.f32.xlu0 %v804_v58 }
 0x533   :  { %v802_v61 = vadd.f32 %v801_v60, %v794_v44  ;;  %v876_v60 = vshrl.u32 %v101_v20, 7 }
 0x535   :  { %v803_v62 = vsub.f32 %v779_v36, %v802_v61  ;;  %vm877_vm11 = vcmp.eq.s32.totalorder %v876_v60, 0 }
 0x536   :  { %vm879_vm15 = vmand %vm877_vm11, %vm878_vm12 }
 0x537   :  { %v809_v63 = vmul.f32 %v803_v62, %v1552_v22  ;;  %v838_v22 = vmul.f32 0.1, %v814_v8  ;;  %vm882_vm1 = vmand %vm877_vm11, %vm881_vm13 }
 0x538   :  { %vm890_vm3 = vmand %vm877_vm11, %vm889_vm14 }
 0x539   :  { %810 = vadd.xlane.f32.xlu2 %v809_v63  ;;  %vm898_vm4 = vmand %vm877_vm11, %vm897_vm0 }
 0x53a   :  { %vm901_vm5 = vmand %vm877_vm11, %vm900_vm2 }
 0x5a5   :  { %v806_v2 = vpop.xlane.xlu0 %805 }
 0x5a6   :  { %v807_v5 = vsub.f32 0.0, %v806_v2 }
 0x5a8   :  { %v808_v10 = vmul.f32 0.125, %v807_v5 }
 0x5aa   :  { %v815_v50 = vsub.f32 0.0, %v808_v10 }
 0x5ac   :  { %v811_v3 = vpop.xlane.xlu2 %810  ;;  %v842_v48 = vrot.slane %v815_v50, 4 }
 0x5ad   :  { %v812_v6 = vsub.f32 0.0, %v811_v3 }
 0x5ae   :  { %v843_v49 = vadd.f32 %v842_v48, %v815_v50 }
 0x5af   :  { %v813_v7 = vmul.f32 0.125, %v812_v6 }
 0x5b0   :  { %v844_v52 = vrot.slane %v843_v49, 2 }
 0x5b1   :  { %v816_v11 = vsub.f32 0.0, %v813_v7 }
 0x5b2   :  { %v845_v54 = vadd.f32 %v844_v52, %v843_v49 }
 0x5b3   :  { %v818_v12 = vsub.f32 %v816_v11, %v814_v8 }
 0x5b4   :  { %v846_v56 = vrot.slane %v845_v54, 1 }
 0x5b5   :  { %v819_v9 = vmul.f32 0.1, %v818_v12 }
 0x5b6   :  { %v847_v61 = vadd.f32 %v846_v56, %v845_v54 }
 0x5b7   :  { %v820_v14 = vadd.f32 %v819_v9, %v815_v50 }
 0x5b8   :  { %v848_v63 = vmul.f32 0.125, %v847_v61 }
 0x5b9   :  { %v824_v15 = vsub.f32 %v820_v14, %v1290_v13  ;;  %v868_v51 = vrot.slane %v820_v14, 4 }
 0x5ba   :  { %v880_v20 = vsel %vm879_vm15, %v848_v63, 0.0 }
 0x5bb   :  { %v837_v16 = vmul.f32 %v824_v15, %v814_v8  ;;  %v827_v17 = vsel %vm826_vm10, %v824_v15, 0.0  ;;  %v869_v53 = vadd.f32 %v868_v51, %v820_v14 }
 0x5bc   :  { %v828_v18 = vrot.slane %v827_v17, 4 }
 0x5bd   :  { %v839_v19 = vsub.f32 %v837_v16, %v838_v22  ;;  %v870_v55 = vrot.slane %v869_v53, 2 }
 0x5be   :  { %v829_v21 = vadd.f32 %v828_v18, %v827_v17 }
 0x5bf   :  { %v850_v23 = vsel %vm826_vm10, %v839_v19, 0.0  ;;  %v840_v25 = vsub.f32 %v815_v50, %v839_v19  ;;  %v871_v58 = vadd.f32 %v870_v55, %v869_v53 }
 0x5c0   :  { %v851_v26 = vrot.slane %v850_v23, 4  ;;  %v830_v59 = vrot.slane %v829_v21, 2 }
 0x5c1   :  { %v859_v27 = vsel %vm826_vm10, %v840_v25, 0.0  ;;  %v872_v62 = vrot.slane %v871_v58, 1 }
 0x5c2   :  { %v852_v28 = vadd.f32 %v851_v26, %v850_v23  ;;  %v860_v29 = vrot.slane %v859_v27, 4  ;;  %v831_v31 = vadd.f32 %v830_v59, %v829_v21 }
 0x5c3   :  { %v873_v0 = vadd.f32 %v872_v62, %v871_v58 }
 0x5c4   :  { %v853_v32 = vrot.slane %v852_v28, 2  ;;  %v861_v33 = vadd.f32 %v860_v29, %v859_v27  ;;  %v832_v30 = vrot.slane %v831_v31, 1 }
 0x5c5   :  { %v874_v4 = vmul.f32 0.125, %v873_v0 }
 0x5c6   :  { %v854_v34 = vadd.f32 %v853_v32, %v852_v28  ;;  %v862_v57 = vrot.slane %v861_v33, 2  ;;  %v833_v35 = vadd.f32 %v832_v30, %v831_v31 }
 0x5c8   :  { %v855_v36 = vrot.slane %v854_v34, 1  ;;  %v863_v37 = vadd.f32 %v862_v57, %v861_v33  ;;  %v834_v38 = vmul.f32 0.125, %v833_v35 }
 0x5ca   :  { %v856_v40 = vadd.f32 %v855_v36, %v854_v34  ;;  %v864_v41 = vrot.slane %v863_v37, 1  ;;  %v835_v42 = vmul.f32 0.99, %v834_v38 }
 0x5cc   :  { %v857_v43 = vmul.f32 0.125, %v856_v40  ;;  %v865_v44 = vadd.f32 %v864_v41, %v863_v37  ;;  %v836_v45 = vadd.f32 %v835_v42, %v817_v39 }
 0x5ce   :  { %885 = vperm.xlu1 %1287, %v857_v43   ;;  %v866_v46 = vmul.f32 0.125, %v865_v44  ;;  %v903_v47 = vperm.slane %v836_v45, 0 }
 0x5d0   :  { %893 = vperm.xlu2 %1288, %v866_v46   ;;  %905 = vperm.xlu0 %1289, %v903_v47  }
 0x62a   :  { %v894_v2 = vpop.permute.xlu2 %893 }
 0x640   :  { %v886_v1 = vpop.permute.xlu1 %885 }
 0x641   :  { %v888_v3 = vsel %vm882_vm1, %v886_v1, %v880_v20 }
 0x642   :  { %v896_v5 = vsel %vm890_vm3, %v894_v2, %v888_v3  ;;  %v906_v6 = vpop.permute.xlu0 %905 }
 0x643   :  { %v899_v7 = vsel %vm898_vm4, %v874_v4, %v896_v5 }
 0x644   :  { %v908_v8 = vsel %vm901_vm5, %v906_v6, %v899_v7 }
 0x645   :  { %909 = vst [vmem:[%s1578_s6] sm:$0xff] %v908_v8 }
 0x646   :  { %914 = vsyncpa [#allocation4], 1 }
 0x647   :  { %915 = vsyncpa [#allocation6], 1 }
 0x648   :  { %916 = vsyncpa [#allocation9], 1 }

</bundles_post_ra>
